<compile_context>
chip_gen: v5e
topology: v5e:2x2
jax: 0.10.0
libtpu: 0.0.40
codegen_flags: <defaults>
</compile_context>

<pallas_src>
import math
from functools import partial

import jax
import jax.numpy as jnp
from jax import lax
from jax.experimental import pallas as pl
from jax.experimental.pallas import tpu as pltpu


# 64 MiB scoped VMEM: >= default on every generation, leaves headroom on
# v7x (64 MiB physical per TC); actual per-kernel usage below is ~3-15 MiB.
VMEM_LIMIT = 64 * 1024 * 1024


def _tile(dim, target):
    """Largest tile <= target that divides dim, preferring (8,128)-friendly sizes.

    Falls back to the full dim only if no aligned divisor exists, avoiding the
    single-giant-block trap for awkward shapes."""
    if dim <= target:
        return dim
    if dim % target == 0:
        return target
    for t in range(target, 0, -1):
        if dim % t == 0 and (t % 128 == 0 or t % 8 == 0):
            return t
    return dim


# ----------------------------- RMSNorm kernel ------------------------------
def rmsnorm_kernel(x_ref, w_ref, o_ref, *, eps):
    x = x_ref[...].astype(jnp.float32)                      # [tm, E]
    ms = jnp.mean(x * x, axis=-1, keepdims=True)
    inv = lax.rsqrt(ms + eps)
    o_ref[...] = (x * inv * w_ref[...].astype(jnp.float32)).astype(o_ref.dtype)


def rmsnorm(x2, w, *, eps=1e-5, out_dtype=jnp.bfloat16, tm=256):
    # x2: [M, E] -> [M, E] out_dtype (bf16 cast for the next matmul is fused in).
    M, E = x2.shape
    tm = _tile(M, tm)
    return pl.pallas_call(
        partial(rmsnorm_kernel, eps=eps),
        grid=(M // tm,),
        out_shape=jax.ShapeDtypeStruct((M, E), out_dtype),
        in_specs=[pl.BlockSpec((tm, E), lambda i: (i, 0)),
                  pl.BlockSpec((1, E), lambda i: (0, 0))],
        out_specs=pl.BlockSpec((tm, E), lambda i: (i, 0)),
        compiler_params=pltpu.CompilerParams(
            dimension_semantics=("parallel",),
            vmem_limit_bytes=VMEM_LIMIT),
    )(x2, w.reshape(1, E))


# ------------------------- tiled matmul kernels -----------------------------
def matmul_kernel(x_ref, w_ref, o_ref, acc_ref):
    @pl.when(pl.program_id(2) == 0)
    def _():
        acc_ref[...] = jnp.zeros_like(acc_ref)

    acc_ref[...] += jnp.dot(x_ref[...], w_ref[...],
                            preferred_element_type=jnp.float32)

    @pl.when(pl.program_id(2) == pl.num_programs(2) - 1)
    def _():
        o_ref[...] = acc_ref[...].astype(o_ref.dtype)


def matmul_res_kernel(x_ref, w_ref, r_ref, o_ref, acc_ref):
    # matmul_kernel with the residual add fused into the epilogue.
    @pl.when(pl.program_id(2) == 0)
    def _():
        acc_ref[...] = jnp.zeros_like(acc_ref)

    acc_ref[...] += jnp.dot(x_ref[...], w_ref[...],
                            preferred_element_type=jnp.float32)

    @pl.when(pl.program_id(2) == pl.num_programs(2) - 1)
    def _():
        o_ref[...] = (acc_ref[...] + r_ref[...].astype(jnp.float32)
                      ).astype(o_ref.dtype)


def linear(x, w, *, residual=None, out_dtype=None, tm=512, tn=512, tk=1024):
    # x: [M, K], w: [K, N] (torch weight transposed); optional residual [M, N].
    M, K = x.shape
    _, N = w.shape
    out_dtype = out_dtype or x.dtype
    tm, tn, tk = _tile(M, tm), _tile(N, tn), _tile(K, tk)

    in_specs = [pl.BlockSpec((tm, tk), lambda i, j, k: (i, k)),
                pl.BlockSpec((tk, tn), lambda i, j, k: (k, j))]
    args = [x, w]
    if residual is not None:
        in_specs.append(pl.BlockSpec((tm, tn), lambda i, j, k: (i, j)))
        args.append(residual)
        kernel = matmul_res_kernel
    else:
        kernel = matmul_kernel

    return pl.pallas_call(
        kernel,
        grid=(M // tm, N // tn, K // tk),
        out_shape=jax.ShapeDtypeStruct((M, N), out_dtype),
        in_specs=in_specs,
        out_specs=pl.BlockSpec((tm, tn), lambda i, j, k: (i, j)),
        scratch_shapes=[pltpu.VMEM((tm, tn), jnp.float32)],
        compiler_params=pltpu.CompilerParams(
            dimension_semantics=("parallel", "parallel", "arbitrary"),
            vmem_limit_bytes=VMEM_LIMIT),
    )(*args)


# ----------------- flash-style grouped-query attention ----------------------
def gqa_flash_kernel(q_ref, k_ref, v_ref, cq_ref, sq_ref, ck_ref, sk_ref,
                     o_ref, q_sc, m_sc, l_sc, acc_sc, *, scale, tq, tkv, gs, d):
    qi = pl.program_id(2)
    ki = pl.program_id(3)
    q_start = qi * tq
    k_start = ki * tkv

    # rotate-half on the XLU: roll by d/2 (direction-agnostic when shift == d/2)
    # then negate what is now the first half.
    sgn = jnp.where(lax.broadcasted_iota(jnp.int32, (1, d), 1) < d // 2,
                    -1.0, 1.0)

    def rotate_half(x):                                     # x: [rows, d] f32
        return pltpu.roll(x, shift=d // 2, axis=1) * sgn

    # ---- prologue (first KV step): init state, RoPE+scale Q once per Q tile --
    @pl.when(ki == 0)
    def _():
        m_sc[...] = jnp.full_like(m_sc, -1e30)
        l_sc[...] = jnp.zeros_like(l_sc)
        acc_sc[...] = jnp.zeros_like(acc_sc)
        cos_q = cq_ref[...]
        sin_q = sq_ref[...]
        for h in range(gs):                                  # static unroll over heads
            q_h = q_ref[0, :, h * d:(h + 1) * d].astype(jnp.float32)   # [tq, d]
            q_h = (q_h * cos_q + rotate_half(q_h) * sin_q) * scale
            q_sc[h] = q_h.astype(q_sc.dtype)

    # ---- main body: skip KV tiles that are fully masked by causality ---------
    @pl.when(k_start <= q_start + tq - 1)
    def _():
        k = k_ref[0].astype(jnp.float32)                     # [tkv, d]
        k = (k * ck_ref[...] + rotate_half(k) * sk_ref[...]).astype(jnp.bfloat16)
        v = v_ref[0]                                         # [tkv, d] bf16

        # Causal mask, shared across the gs heads of this KV group.
        # (Tiles strictly below the diagonal could skip it; the where is cheap
        #  VPU filler underneath the MXU matmuls, so it is kept unconditional.)
        row = q_start + lax.broadcasted_iota(jnp.int32, (tq, tkv), 0)
        col = k_start + lax.broadcasted_iota(jnp.int32, (tq, tkv), 1)
        causal = col <= row

        for h in range(gs):                                  # static unroll over heads
            s = jnp.einsum('qd,kd->qk', q_sc[h], k,
                           preferred_element_type=jnp.float32)          # [tq, tkv]
            s = jnp.where(causal, s, -1e30)
            m_prev = m_sc[h]                                             # [tq, 1]
            m_new = jnp.maximum(m_prev, s.max(axis=-1, keepdims=True))
            alpha = jnp.exp(m_prev - m_new)
            p = jnp.exp(s - m_new)
            l_sc[h] = alpha * l_sc[h] + p.sum(axis=-1, keepdims=True)
            acc_sc[h] = alpha * acc_sc[h] + jnp.dot(
                p.astype(jnp.bfloat16), v, preferred_element_type=jnp.float32)
            m_sc[h] = m_new

    # ---- epilogue (last KV step): normalize, emit head-packed [tq, gs*d] rows --
    @pl.when(ki == pl.num_programs(3) - 1)
    def _():
        for h in range(gs):
            inv = pl.reciprocal(l_sc[h], approx=True)
            o_ref[0, :, h * d:(h + 1) * d] = (acc_sc[h] * inv).astype(o_ref.dtype)


def gqa_flash_attention(qkv, cos, sin, *, n_heads, n_kv_groups, tq=512, tkv=512):
    # qkv: [B, S, (H + 2*KVG)*D] bf16 (fused Q|K|V projection, head-packed)
    # cos/sin: [S, D] f32.  Returns attention output [B, S, H*D] bf16 in the
    # same head-packed column layout the wo projection expects (no transposes).
    B, S, C = qkv.shape
    D = cos.shape[-1]
    H, KVG = n_heads, n_kv_groups
    gs = H // KVG
    E = H * D
    assert C == (H + 2 * KVG) * D
    tq, tkv = _tile(S, tq), _tile(S, tkv)
    scale = 1.0 / math.sqrt(D)

    return pl.pallas_call(
        partial(gqa_flash_kernel, scale=scale, tq=tq, tkv=tkv, gs=gs, d=D),
        grid=(B, KVG, S // tq, S // tkv),
        out_shape=jax.ShapeDtypeStruct((B, S, E), qkv.dtype),
        in_specs=[
            # Q columns of this KV group (all gs heads, contiguous gs*D columns)
            pl.BlockSpec((1, tq, gs * D), lambda b, g, i, j: (b, i, g)),
            # K / V columns of this KV group (D columns each)
            pl.BlockSpec((1, tkv, D), lambda b, g, i, j: (b, j, H + g)),
            pl.BlockSpec((1, tkv, D), lambda b, g, i, j: (b, j, H + KVG + g)),
            pl.BlockSpec((tq, D), lambda b, g, i, j: (i, 0)),   # cos for Q rows
            pl.BlockSpec((tq, D), lambda b, g, i, j: (i, 0)),   # sin for Q rows
            pl.BlockSpec((tkv, D), lambda b, g, i, j: (j, 0)),  # cos for K rows
            pl.BlockSpec((tkv, D), lambda b, g, i, j: (j, 0)),  # sin for K rows
        ],
        out_specs=pl.BlockSpec((1, tq, gs * D), lambda b, g, i, j: (b, i, g)),
        scratch_shapes=[
            pltpu.VMEM((gs, tq, D), jnp.bfloat16),   # RoPE'd + scaled Q (reused over KV)
            pltpu.VMEM((gs, tq, 1), jnp.float32),    # m (lane-padded; small)
            pltpu.VMEM((gs, tq, 1), jnp.float32),    # l (lane-padded; small)
            pltpu.VMEM((gs, tq, D), jnp.float32),    # output accumulator
        ],
        compiler_params=pltpu.CompilerParams(
            dimension_semantics=("parallel", "parallel", "parallel", "arbitrary"),
            vmem_limit_bytes=VMEM_LIMIT),
    )(qkv, qkv, qkv, cos, sin, cos, sin)


# ---------------------------- SwiGLU FFN kernel -----------------------------
def ffn_kernel(x_ref, w1_ref, w2_ref, w3_ref, r_ref, o_ref, acc_ref):
    h = pl.program_id(1)

    @pl.when(h == 0)
    def _():
        acc_ref[...] = jnp.zeros_like(acc_ref)

    x = x_ref[...]                                            # bf16 [tm, E]
    h1 = jnp.dot(x, w1_ref[...], preferred_element_type=jnp.float32)
    h2 = jnp.dot(x, w2_ref[...], preferred_element_type=jnp.float32)
    g = (h1 * jax.nn.sigmoid(h1)) * h2                        # SiLU(fc1) * fc2
    acc_ref[...] += jnp.dot(g.astype(x.dtype), w3_ref[...],
                            preferred_element_type=jnp.float32)

    @pl.when(h == pl.num_programs(1) - 1)
    def _():
        o_ref[...] = (acc_ref[...] + r_ref[...].astype(jnp.float32)
                      ).astype(o_ref.dtype)


def feed_forward(x, w1, w2, w3, residual, *, tm=512, th=512):
    # x: [M, E] bf16; residual: [M, E] f32; output f32 (residual fused).
    # NOTE: for very large E on v7x (64 MiB VMEM), drop th to 256.
    M, E = x.shape
    HID = w1.shape[1]
    tm, th = _tile(M, tm), _tile(HID, th)
    return pl.pallas_call(
        ffn_kernel,
        grid=(M // tm, HID // th),
        out_shape=jax.ShapeDtypeStruct((M, E), jnp.float32),
        in_specs=[pl.BlockSpec((tm, E), lambda i, h: (i, 0)),
                  pl.BlockSpec((E, th), lambda i, h: (0, h)),
                  pl.BlockSpec((E, th), lambda i, h: (0, h)),
                  pl.BlockSpec((th, E), lambda i, h: (h, 0)),
                  pl.BlockSpec((tm, E), lambda i, h: (i, 0))],
        out_specs=pl.BlockSpec((tm, E), lambda i, h: (i, 0)),
        scratch_shapes=[pltpu.VMEM((tm, E), jnp.float32)],
        compiler_params=pltpu.CompilerParams(
            dimension_semantics=("parallel", "arbitrary"),
            vmem_limit_bytes=VMEM_LIMIT),
    )(x, w1, w2, w3, residual)


# ------------------------------- RoPE (glue) --------------------------------
def compute_rope_params(head_dim, base, context_length):
    # TODO(synk): llama3 frequency smoothing (cfg['rope_freq']) not applied; cfg uses rope_freq=None.
    inv_freq = 1.0 / (base ** (jnp.arange(0, head_dim, 2, dtype=jnp.float32) / head_dim))
    pos = jnp.arange(context_length, dtype=jnp.float32)
    angles = pos[:, None] * inv_freq[None, :]                 # [S, D/2]
    angles = jnp.concatenate([angles, angles], axis=-1)       # [S, D]
    return jnp.cos(angles), jnp.sin(angles)


def apply_rope(x, cos, sin):
    # x: [B, H, S, D] — used only by the pure-JAX reference.
    d = x.shape[-1]
    x1, x2 = x[..., : d // 2], x[..., d // 2:]
    rotated = jnp.concatenate([-x2, x1], axis=-1)
    return (x.astype(jnp.float32) * cos + rotated.astype(jnp.float32) * sin).astype(x.dtype)


# --------------------------- TransformerBlock -------------------------------
def transformer_block(x, params, cfg):
    B, S, E = x.shape
    H = cfg['n_heads']
    KVG = cfg['n_kv_groups']
    D = E // H
    M = B * S
    C = (H + 2 * KVG) * D

    cos, sin = params['cos'][:S], params['sin'][:S]

    # ---- attention sub-block ----
    shortcut = x.reshape(M, E)                                # f32 residual stream
    xb = rmsnorm(shortcut, params['norm1_w'])                 # [M, E] bf16 (cast fused)

    # fused Q|K|V projection with a pre-fused weight (one lane-dense matmul)
    qkv = linear(xb, params['w_qkv'])                         # [M, C] bf16
    qkv = qkv.reshape(B, S, C)                                # free reshape, no transpose

    att = gqa_flash_attention(qkv, cos, sin, n_heads=H, n_kv_groups=KVG,
                              tq=cfg.get('att_tq', 512),
                              tkv=cfg.get('att_tkv', 512))    # [B, S, E] bf16
    att = att.reshape(M, E)                                   # free reshape

    # output projection with fused residual add (f32 output)
    x1 = linear(att, params['wo'], residual=shortcut, out_dtype=jnp.float32)

    # ---- feed-forward sub-block ----
    xb2 = rmsnorm(x1, params['norm2_w'])                      # [M, E] bf16
    out = feed_forward(xb2, params['w1'], params['w2'], params['w3'],
                       residual=x1)                           # [M, E] f32 (residual fused)
    return out.reshape(B, S, E)


# --------------------------- pure-JAX reference ------------------------------
def transformer_block_ref(x, params, cfg):
    B, S, E = x.shape
    H, KVG = cfg['n_heads'], cfg['n_kv_groups']
    D = E // H
    gs = H // KVG

    def rms(v, w):
        ms = jnp.mean(v * v, axis=-1, keepdims=True)
        return v * lax.rsqrt(ms + 1e-5) * w

    cos, sin = params['cos'][:S], params['sin'][:S]

    shortcut = x
    xb = rms(x, params['norm1_w']).astype(jnp.bfloat16).reshape(B * S, E)
    q = jnp.dot(xb, params['wq'], preferred_element_type=jnp.float32).astype(jnp.bfloat16)
    k = jnp.dot(xb, params['wk'], preferred_element_type=jnp.float32).astype(jnp.bfloat16)
    v = jnp.dot(xb, params['wv'], preferred_element_type=jnp.float32).astype(jnp.bfloat16)
    q = q.reshape(B, S, H, D).transpose(0, 2, 1, 3)
    k = k.reshape(B, S, KVG, D).transpose(0, 2, 1, 3)
    v = v.reshape(B, S, KVG, D).transpose(0, 2, 1, 3)
    q, k = apply_rope(q, cos, sin), apply_rope(k, cos, sin)
    k = jnp.repeat(k, gs, axis=1)
    v = jnp.repeat(v, gs, axis=1)
    s = jnp.einsum('bhqd,bhkd->bhqk', q.astype(jnp.float32), k.astype(jnp.float32)) / math.sqrt(D)
    mask = jnp.tril(jnp.ones((S, S), bool))
    s = jnp.where(mask, s, -jnp.inf)
    p = jax.nn.softmax(s, axis=-1)
    att = jnp.einsum('bhqk,bhkd->bhqd', p, v.astype(jnp.float32)).astype(jnp.bfloat16)
    att = att.transpose(0, 2, 1, 3).reshape(B * S, E)
    att = jnp.dot(att, params['wo'], preferred_element_type=jnp.float32)
    x = att.reshape(B, S, E) + shortcut

    shortcut = x
    xb = rms(x, params['norm2_w']).astype(jnp.bfloat16).reshape(B * S, E)
    h1 = jnp.dot(xb, params['w1'], preferred_element_type=jnp.float32)
    h2 = jnp.dot(xb, params['w2'], preferred_element_type=jnp.float32)
    hmid = ((h1 * jax.nn.sigmoid(h1)) * h2).astype(jnp.bfloat16)
    out = jnp.dot(hmid, params['w3'], preferred_element_type=jnp.float32).reshape(B, S, E)
    return out + shortcut


# ------------------------------------ main -----------------------------------
if __name__ == "__main__":
    # D=128 keeps every attention BlockSpec lane-aligned; att_tq/att_tkv=128
    # gives a 2x2 Q/KV tile grid so the flash loop, causal-tile skipping and
    # fully-visible paths are all exercised at a small sequence length.
    cfg = dict(emb_dim=512, hidden_dim=1024, context_length=256,
               n_heads=4, n_kv_groups=2, rope_base=10000.0,
               rope_freq=None, dtype=jnp.bfloat16,
               att_tq=128, att_tkv=128)

    B, S, E = 2, 256, cfg['emb_dim']
    H, KVG = cfg['n_heads'], cfg['n_kv_groups']
    D = E // H
    HID = cfg['hidden_dim']

    key = jax.random.PRNGKey(0)
    ks = jax.random.split(key, 8)

    def w_init(k, shape):
        return (0.02 * jax.random.normal(k, shape, jnp.float32)).astype(jnp.bfloat16)

    cos, sin = compute_rope_params(D, cfg['rope_base'], cfg['context_length'])
    wq = w_init(ks[0], (E, E))            # torch weight.T layout: [in, out]
    wk = w_init(ks[1], (E, KVG * D))
    wv = w_init(ks[2], (E, KVG * D))
    params = dict(
        norm1_w=jnp.ones((E,), jnp.float32),
        norm2_w=jnp.ones((E,), jnp.float32),
        wq=wq, wk=wk, wv=wv,
        w_qkv=jnp.concatenate([wq, wk, wv], axis=1),   # pre-fused (hoisted out of forward)
        wo=w_init(ks[3], (E, E)),
        w1=w_init(ks[4], (E, HID)),
        w2=w_init(ks[5], (E, HID)),
        w3=w_init(ks[6], (HID, E)),
        cos=cos, sin=sin,
    )

    x = jax.random.normal(ks[7], (B, S, E), jnp.float32)

    out = jax.block_until_ready(transformer_block(x, params, cfg))
    ref = jax.block_until_ready(transformer_block_ref(x, params, cfg))

    assert out.shape == (B, S, E) and out.dtype == jnp.float32
    assert jnp.allclose(out, ref, rtol=2e-2, atol=2e-2), "mismatch vs reference"
    print("KERNEL_OK")
</pallas_src>

<mosaic_0001>
module attributes {stable_mosaic.version = 11 : i64} {
  func.func @rmsnorm_kernel(%arg0: i32, %arg1: memref<256x512xf32, #tpu.memory_space<vmem>>, %arg2: memref<1x512xf32, #tpu.memory_space<vmem>>, %arg3: memref<256x512xbf16, #tpu.memory_space<vmem>>) attributes {dimension_semantics = [#tpu.dimension_semantics<parallel>], iteration_bounds = array<i64: 2>, scalar_prefetch = 0 : i64, scratch_operands = 0 : i64, tpu.core_type = #tpu.core_type<tc>, window_params = [{transform_indices = @transform_0, window_bounds = array<i64: 256, 512>}, {pipeline_mode = #tpu.pipeline_mode<synchronous>, transform_indices = @transform_1, window_bounds = array<i64: 1, 512>}, {transform_indices = @transform_2, window_bounds = array<i64: 256, 512>}]} {
    %c0 = arith.constant 0 : index
    %c0_0 = arith.constant 0 : index
    %0 = vector.load %arg1[%c0, %c0_0] : memref<256x512xf32, #tpu.memory_space<vmem>>, vector<256x512xf32>
    %1 = arith.mulf %0, %0 : vector<256x512xf32>
    %cst = arith.constant dense<0.000000e+00> : vector<256xf32>
    %2 = vector.multi_reduction <add>, %1, %cst [1] : vector<256x512xf32> to vector<256xf32>
    %3 = vector.shape_cast %2 : vector<256xf32> to vector<256x1xf32>
    %cst_1 = arith.constant 5.120000e+02 : f32
    %4 = vector.broadcast %cst_1 : f32 to vector<256x1xf32>
    %5 = arith.divf %3, %4 : vector<256x1xf32>
    %cst_2 = arith.constant 9.99999974E-6 : f32
    %6 = vector.broadcast %cst_2 : f32 to vector<256x1xf32>
    %7 = arith.addf %5, %6 : vector<256x1xf32>
    %8 = math.rsqrt %7 : vector<256x1xf32>
    %9 = vector.broadcast %8 : vector<256x1xf32> to vector<256x512xf32>
    %10 = arith.mulf %0, %9 : vector<256x512xf32>
    %c0_3 = arith.constant 0 : index
    %c0_4 = arith.constant 0 : index
    %11 = vector.load %arg2[%c0_3, %c0_4] : memref<1x512xf32, #tpu.memory_space<vmem>>, vector<1x512xf32>
    %12 = vector.broadcast %11 : vector<1x512xf32> to vector<256x512xf32>
    %13 = arith.mulf %10, %12 : vector<256x512xf32>
    %14 = arith.truncf %13 : vector<256x512xf32> to vector<256x512xbf16>
    %c0_5 = arith.constant 0 : index
    %c0_6 = arith.constant 0 : index
    %15 = vector.load %arg3[%c0_5, %c0_6] : memref<256x512xbf16, #tpu.memory_space<vmem>>, vector<256x512xbf16>
    tpu.vector_store %arg3[%c0_5, %c0_6], %14 {strides = array<i32>} : memref<256x512xbf16, #tpu.memory_space<vmem>>, vector<256x512xbf16>,
    return
  }
  func.func @transform_0(%arg0: i32) -> (i32, i32) {
    %c0_i32 = arith.constant 0 : i32
    %c0_i32_0 = arith.constant 0 : i32
    return %arg0, %c0_i32 : i32, i32
  }
  func.func @transform_1(%arg0: i32) -> (i32, i32) {
    %c0_i32 = arith.constant 0 : i32
    %c0_i32_0 = arith.constant 0 : i32
    %c0_i32_1 = arith.constant 0 : i32
    return %c0_i32, %c0_i32_0 : i32, i32
  }
  func.func @transform_2(%arg0: i32) -> (i32, i32) {
    %c0_i32 = arith.constant 0 : i32
    %c0_i32_0 = arith.constant 0 : i32
    return %arg0, %c0_i32 : i32, i32
  }
}

</mosaic_0001>

<bundles_post_ra>
// kernel: tpu_custom_call.1
= control target key start
LH: loop header
LB: loop body
LE: loop exit
PB: predicated region body
PF: predicated region fallthrough
CT: control target
= control target key end

     0   :  { %7 = vsyncpa [#allocation3], 0  ;;  %s3079_s0 = inlined_call_operand.hbm [shape: f32[512,512], index: 0, kind: input, shape index: {}]   ;;  %s3080_s1 = inlined_call_operand.hbm [shape: f32[1,512], index: 1, kind: input, shape index: {}]   ;;  %s3081_s2 = inlined_call_operand.hbm [shape: bf16[512,512], index: 2, kind: output, shape index: {}]  }
   0x1   :  { %9 = vsyncpa [#allocation3 + $0x1], 0 }
   0x2   :  { %10 = vsyncpa [#allocation6], 0 }
   0x3   :  { %11 = vsyncpa [#allocation4], 0 }
   0x4   :  { %13 = vsyncpa [#allocation4 + $0x1], 0  ;;  %s1892_s9 = smov 0   ;;  %s1894_s10 = smov 0  }
   0x5   :  { %s1896_s11 = smov 0   ;;  %s1898_s12 = smov 0  }
   0x6 LB: > { %s1913_s13 = sadd.s32 4294967295, %s1869_s12   ;;  %s1483_s14 = sadd.s32 4294967294, %s1869_s12   ;;  %s1869_s12 = sphi %s1898_s12, %s3092_s12   ;;  %s1865_s11 = sphi %s1896_s11, %s3091_s11   ;;  %s1861_s10 = sphi %s1894_s10, %s3090_s10   ;;  %s1857_s9 = sphi %s1892_s9, %s3089_s9  }
   0x7   : > { %s1917_s15 = sadd.s32 1, %s1869_s12   ;;  %s26_s16 = sadd.s32 1, %s1865_s11 }
   0x8   : > { %s23_s17 = ssub.s32 %s1869_s12, %s1917_s15  ;;  %p33_p0 = scmp.ne.s32.totalorder %s1865_s11, %s1861_s10 }
   0x9   : > { %p24_p1 = scmp.eq.s32.totalorder %s23_s17, 0  ;;  %p34_p2 = scmp.eq.s32.totalorder %s1869_s12, 0 }
   0xa   : > { %p39_p3 = scmp.ne.s32.totalorder %s1861_s10, %s1857_s9  ;;  %p40_p4 = scmp.eq.s32.totalorder %s1913_s13, 0 }
   0xb   : > { %s1929_s18 = scalar_select %p24_p1, %s1865_s11, %s26_s16  }
   0xc   : > { %p1931_p5 = por %p34_p2, %p33_p0  ;;  %p1937_p6 = por %p40_p4, %p39_p3 }
   0xd   : > { %p84_p7 = scmp.eq.s32.totalorder %s1913_s13, 1  ;;  %p90_p8 = scmp.eq.s32.totalorder %s1483_s14, 1 }
   0xe   : > { %p1484_p9 = scmp.ge.s32.totalorder %s1869_s12, 1  ;;  %p97_p10 = scmp.lt.s32.totalorder %s1869_s12, 3 }
   0xf   : > { %p1944_p11 = por %p84_p7, %p33_p0  ;;  %p1948_p12 = por %p90_p8, %p39_p3 }
  0x10   : > { %p1952_p13 = pnand %p1484_p9, %p97_p10  ;;  %s109_s26 = sshll.u32 %s3080_s1, 4  ;;  %s110_s26 = int_to_ptr.hbm [resolvable:$true] %s109_s26 }
  0x11   : > { %s1871_s27 = smov [#allocation5]   ;;  %p1526_p3 = scmp.lt.s32.totalorder %s1869_s12, 2 }
  0x12   : > { %p1513_p1 = pneg %p1952_p13  ;;  %s111_s28 = sshll.u32 %s1871_s27, 4  ;;  %s112_s28 = int_to_ptr.vmem [resolvable:$true] %s111_s28 }
  0x13   : > { %s122_s29 = sand.u32 1, %s1865_s11   ;;  %p1968_p7 = pnand %p1526_p3, %p1931_p5 }
  0x14   : > { %p1514_p2 = pnand %p1513_p1, %p40_p4  ;;  %s1487_s3 = sshll.u32 %s122_s29, 10 }
  0x15   : > { %s1502_s4 = sshll.u32 %s1869_s12, 10  ;;  %s126_s14 = scalar_lea.vmem [#allocation2], %s1487_s3 }
  0x16   : > { %1516 = dma.hbm_to_vmem [thread:$0]  (!%p1514_p2), %s110_s26, 64, %s112_s28, [#allocation6]  }
  0x17   : > { %s132_s7 = scalar_lea.hbm %s3079_s0, %s1502_s4  ;;  %s135_s16 = sshll.u32 %s126_s14, 4  ;;  %s136_s16 = int_to_ptr.vmem [resolvable:$true] %s135_s16 }
  0x18   : > { %s133_s8 = sshll.u32 %s132_s7, 4  ;;  %s123_s17 = scalar_lea.sflag [#allocation3], %s122_s29  ;;  %s134_s8 = int_to_ptr.hbm [resolvable:$true] %s133_s8 }
  0x19   : > { %s1769_s24 = sshra.s32 %s134_s8, 4  ;;  %p1773_p8 = pneg %p1968_p7  ;;  %s1770_s24 = int_to_ptr.hbm [resolvable:$true] %s1769_s24 }
  0x1a   : > { %s1771_s19 = scalar_lea.hbm %s1770_s24, 1024  ;;  %s1776_s27 = scalar_lea.hbm %s3079_s0, 2048 }
  0x1b   : > { %p1772_p5 = scmp.ne.s32.totalorder %s1770_s24, %s1771_s19  ;;  %p1777_p1 = scmp.lt.s32.totalorder %s1770_s24, %s3079_s0 }
  0x1c   : > { %p1778_p2 = scmp.lt.s32.totalorder %s1776_s27, %s1771_s19 }
  0x1d   : > { %p1774_p9 = pnand %p1773_p8, %p1772_p5 }
  0x1e   : > { %p1779_p3 = por %p1778_p2, %p1777_p1 }
  0x1f   : > { %p1775_p10 = pneg %p1774_p9 }
  0x21   : > { %p1780_p0 = pnand %p1779_p3, %p1775_p10 }
  0x23   : > { %1783 = shalt.err (!%p1780_p0)
}
  0x24   : > { %s1872_s29 = smov 512   ;;  %s1873_s3 = smov 32  }
  0x25   : > { %1520 = dma.hbm_to_vmem [thread:$0]  (!%p1968_p7), %s134_s8, 16384, %s136_s16, %s123_s17, %s1872_s29, %s1872_s29, %s1873_s3  }
  0x26   : > { %147 = sbr.rel (%p1952_p13) target bundleno = 362 (0x16a), region = 28  ;;  %s1989_s5 = sand.u32 (!%p1952_p13), 1, %s1861_s10  }
  0x27   : > { %s1492_s6 = sshll.u32 (!%p1952_p13), %s1989_s5, 10  ;;  %s150_s7 = scalar_lea.sflag (!%p1952_p13), [#allocation3], %s1989_s5 }
  0x28   : > { %s1993_s14 = scalar_lea.vmem (!%p1952_p13), [#allocation2], %s1492_s6 }
  0x2b   : > { %1844 = dma.done.wait (%p1937_p6), %s150_s7, 16384  }
  0x2c   : > { %1846 = vsyncadd (%p1937_p6), %s150_s7, 4294950912 }
  0x2d   : > { %1848 = dma.done.wait (%p40_p4), [#allocation6], 64  }
  0x2e   : > { %1850 = vsyncadd (%p40_p4), [#allocation6], 4294967232  ;;  %v2004_v0 = vld [vmem:[%s1993_s14 + $0x80] sm:$0xff]  ;;  %v2007_v1 = vld [vmem:[%s1993_s14 + $0x88] sm:$0xff]  ;;  %s1494_s20 = sshll.u32 %s1989_s5, 9  ;;  %s1504_s30 = sshll.u32 %s1913_s13, 9 }
  0x2f   : > { %v2010_v2 = vld [vmem:[%s1993_s14 + $0x90] sm:$0xff]  ;;  %v2013_v3 = vld [vmem:[%s1993_s14 + $0x98] sm:$0xff]  ;;  %v326_v4 = vmul.f32 %v2004_v0, %v2004_v0  ;;  %v327_v5 = vmul.f32 %v2007_v1, %v2007_v1  ;;  %v2022_v7 = vld [vmem:[%s1993_s14 + $0x40] sm:$0xff]  ;;  %s2310_s23 = scalar_lea.vmem [#allocation7], %s1494_s20  ;;  %s1396_s17 = scalar_lea.hbm %s3081_s2, %s1504_s30 }
  0x30   : > { %v328_v6 = vmul.f32 %v2010_v2, %v2010_v2  ;;  %v2025_v8 = vld [vmem:[%s1993_s14 + $0x48] sm:$0xff]  ;;  %v329_v9 = vmul.f32 %v2013_v3, %v2013_v3  ;;  %v2030_v10 = vld [vmem:[%s1993_s14 + $0x50] sm:$0xff]  ;;  %v2033_v11 = vld [vmem:[%s1993_s14 + $0x58] sm:$0xff]  ;;  %v318_v12 = vmul.f32 %v2022_v7, %v2022_v7  ;;  %s1397_s13 = sshll.u32 %s2310_s23, 4  ;;  %s1399_s24 = sshll.u32 %s1396_s17, 4  ;;  %s1398_s13 = int_to_ptr.vmem [resolvable:$true] %s1397_s13  ;;  %s1400_s24 = int_to_ptr.hbm [resolvable:$true] %s1399_s24 }
  0x31   : > { %v319_v13 = vmul.f32 %v2025_v8, %v2025_v8  ;;  %v2040_v14 = vld [vmem:[%s1993_s14] sm:$0xff]  ;;  %v458_v15 = vadd.f32 %v327_v5, %v326_v4  ;;  %v320_v16 = vmul.f32 %v2030_v10, %v2030_v10  ;;  %v321_v17 = vmul.f32 %v2033_v11, %v2033_v11  ;;  %v2047_v18 = vld [vmem:[%s1993_s14 + $0x8] sm:$0xff]  ;;  %v2050_v19 = vld [vmem:[%s1993_s14 + $0x10] sm:$0xff]  ;;  %s1384_s19 = scalar_lea.sflag [#allocation4], %s1989_s5  ;;  %s1813_s25 = sshra.s32 %s1400_s24, 4  ;;  %s1814_s25 = int_to_ptr.hbm [resolvable:$true] %s1813_s25 }
  0x32   : > { %v2053_v20 = vld [vmem:[%s1993_s14 + $0x18] sm:$0xff]  ;;  %v310_v21 = vmul.f32 %v2040_v14, %v2040_v14  ;;  %v311_v23 = vmul.f32 %v2047_v18, %v2047_v18  ;;  %v312_v24 = vmul.f32 %v2050_v19, %v2050_v19  ;;  %v2064_v26 = vld [vmem:[%s1993_s14 + $0xa0] sm:$0xff]  ;;  %v2067_v27 = vld [vmem:[%s1993_s14 + $0xa8] sm:$0xff]  ;;  %s1815_s26 = scalar_lea.hbm %s1814_s25, 512  ;;  %s1819_s4 = scalar_lea.hbm %s3081_s2, 1024 }
  0x33   : > { %v448_v22 = vadd.f32 %v319_v13, %v318_v12  ;;  %v313_v25 = vmul.f32 %v2053_v20, %v2053_v20  ;;  %v2070_v28 = vld [vmem:[%s1993_s14 + $0xb0] sm:$0xff]  ;;  %v459_v29 = vadd.f32 %v458_v15, %v328_v6  ;;  %v2073_v30 = vld [vmem:[%s1993_s14 + $0xb8] sm:$0xff]  ;;  %v330_v31 = vmul.f32 %v2064_v26, %v2064_v26  ;;  %v2082_v34 = vld [vmem:[%s1993_s14 + $0x60] sm:$0xff]  ;;  %p1816_p4 = scmp.ne.s32.totalorder %s1814_s25, %s1815_s26  ;;  %p1820_p0 = scmp.lt.s32.totalorder %s1814_s25, %s3081_s2 }
  0x34   : > { %v331_v32 = vmul.f32 %v2067_v27, %v2067_v27  ;;  %v332_v33 = vmul.f32 %v2070_v28, %v2070_v28  ;;  %v2085_v35 = vld [vmem:[%s1993_s14 + $0x68] sm:$0xff]  ;;  %v438_v37 = vadd.f32 %v311_v23, %v310_v21  ;;  %v333_v38 = vmul.f32 %v2073_v30, %v2073_v30  ;;  %v2090_v39 = vld [vmem:[%s1993_s14 + $0x70] sm:$0xff]  ;;  %v2093_v40 = vld [vmem:[%s1993_s14 + $0x78] sm:$0xff]  ;;  %p1821_p7 = scmp.lt.s32.totalorder %s1819_s4, %s1815_s26 }
  0x35   : > { %v449_v36 = vadd.f32 %v448_v22, %v320_v16  ;;  %v322_v41 = vmul.f32 %v2082_v34, %v2082_v34  ;;  %v186_v42 = vld [vmem:[%s1993_s14 + $0x20] sm:$0xff]  ;;  %v460_v43 = vadd.f32 %v459_v29, %v329_v9  ;;  %v323_v45 = vmul.f32 %v2085_v35, %v2085_v35  ;;  %v187_v47 = vld [vmem:[%s1993_s14 + $0x28] sm:$0xff]  ;;  %v188_v48 = vld [vmem:[%s1993_s14 + $0x30] sm:$0xff]  ;;  %p1817_p6 = pnand %p1816_p4, %p1944_p11 }
  0x36   : > { %v463_v44 = vadd.f32 %v331_v32, %v330_v31  ;;  %v324_v46 = vmul.f32 %v2090_v39, %v2090_v39  ;;  %v439_v50 = vadd.f32 %v438_v37, %v312_v24  ;;  %v325_v51 = vmul.f32 %v2093_v40, %v2093_v40  ;;  %v214_v53 = vld [vmem:[%s1993_s14 + $0x100] sm:$0xff]  ;;  %v215_v54 = vld [vmem:[%s1993_s14 + $0x108] sm:$0xff]  ;;  %v2109_v57 = vld [vmem:[%s1993_s14 + $0x38] sm:$0xff]  ;;  %p1822_p5 = por %p1821_p7, %p1820_p0 }
  0x37   : > { %v450_v49 = vadd.f32 %v449_v36, %v321_v17  ;;  %v314_v52 = vmul.f32 %v186_v42, %v186_v42  ;;  %461 = vadd.xlane.f32.xlu2 %v460_v43  ;;  %v453_v56 = vadd.f32 %v323_v45, %v322_v41  ;;  %v315_v58 = vmul.f32 %v187_v47, %v187_v47  ;;  %v210_v60 = vld [vmem:[%s1993_s14 + $0xe0] sm:$0xff]  ;;  %v211_v61 = vld [vmem:[%s1993_s14 + $0xe8] sm:$0xff]  ;;  %v216_v63 = vld [vmem:[%s1993_s14 + $0x110] sm:$0xff]  ;;  %p1818_p13 = pneg %p1817_p6 }
  0x38   : > { %v464_v55 = vadd.f32 %v463_v44, %v332_v33  ;;  %v316_v59 = vmul.f32 %v188_v48, %v188_v48  ;;  %v440_v62 = vadd.f32 %v439_v50, %v313_v25  ;;  %v342_v4 = vmul.f32 %v214_v53, %v214_v53  ;;  %v212_v12 = vld [vmem:[%s1993_s14 + $0xf0] sm:$0xff]  ;;  %v206_v13 = vld [vmem:[%s1993_s14 + $0xc0] sm:$0xff]  ;;  %v207_v15 = vld [vmem:[%s1993_s14 + $0xc8] sm:$0xff] }
  0x39   : > { %451 = vadd.xlane.f32.xlu1 %v450_v49  ;;  %v343_v5 = vmul.f32 %v215_v54, %v215_v54  ;;  %v454_v6 = vadd.f32 %v453_v56, %v324_v46  ;;  %v443_v9 = vadd.f32 %v315_v58, %v314_v52  ;;  %v317_v17 = vmul.f32 %v2109_v57, %v2109_v57  ;;  %v208_v31 = vld [vmem:[%s1993_s14 + $0xd0] sm:$0xff]  ;;  %v2121_v32 = vld [vmem:[%s1993_s14 + $0x118] sm:$0xff]  ;;  %v226_v41 = vld [vmem:[%s1993_s14 + $0x160] sm:$0xff]  ;;  %p1823_p8 = pnand %p1822_p5, %p1818_p13 }
  0x3a   : > { %441 = vadd.xlane.f32.xlu0 %v440_v62  ;;  %v465_v16 = vadd.f32 %v464_v55, %v333_v38  ;;  %v338_v21 = vmul.f32 %v210_v60, %v210_v60  ;;  %v339_v22 = vmul.f32 %v211_v61, %v211_v61  ;;  %v344_v25 = vmul.f32 %v216_v63, %v216_v63  ;;  %v227_v42 = vld [vmem:[%s1993_s14 + $0x168] sm:$0xff]  ;;  %v213_v43 = vld [vmem:[%s1993_s14 + $0xf8] sm:$0xff]  ;;  %v222_v44 = vld [vmem:[%s1993_s14 + $0x140] sm:$0xff] }
  0x3b   : > { %v455_v23 = vadd.f32 %v454_v6, %v325_v51  ;;  %v444_v24 = vadd.f32 %v443_v9, %v316_v59  ;;  %v478_v29 = vadd.f32 %v343_v5, %v342_v4  ;;  %v340_v33 = vmul.f32 %v212_v12, %v212_v12  ;;  %v223_v45 = vld [vmem:[%s1993_s14 + $0x148] sm:$0xff]  ;;  %v209_v51 = vld [vmem:[%s1993_s14 + $0xd8] sm:$0xff]  ;;  %v218_v54 = vld [vmem:[%s1993_s14 + $0x120] sm:$0xff] }
  0x3c   : > { %v473_v36 = vadd.f32 %v339_v22, %v338_v21  ;;  %v334_v37 = vmul.f32 %v206_v13, %v206_v13  ;;  %v335_v38 = vmul.f32 %v207_v15, %v207_v15  ;;  %v336_v47 = vmul.f32 %v208_v31, %v208_v31  ;;  %v219_v55 = vld [vmem:[%s1993_s14 + $0x128] sm:$0xff]  ;;  %v228_v59 = vld [vmem:[%s1993_s14 + $0x170] sm:$0xff] }
  0x3d   : > { %v445_v46 = vadd.f32 %v444_v24, %v317_v17  ;;  %v345_v49 = vmul.f32 %v2121_v32, %v2121_v32  ;;  %v479_v50 = vadd.f32 %v478_v29, %v344_v25  ;;  %v354_v52 = vmul.f32 %v226_v41, %v226_v41  ;;  %v224_v62 = vld [vmem:[%s1993_s14 + $0x150] sm:$0xff]  ;;  %v229_v17 = vld [vmem:[%s1993_s14 + $0x178] sm:$0xff]  ;;  %v239_v24 = vld [vmem:[%s1993_s14 + $0x1c8] sm:$0xff] }
  0x3e   : > { %v468_v48 = vadd.f32 %v335_v38, %v334_v37  ;;  %v355_v53 = vmul.f32 %v227_v42, %v227_v42  ;;  %v341_v56 = vmul.f32 %v213_v43, %v213_v43  ;;  %v474_v58 = vadd.f32 %v473_v36, %v340_v33  ;;  %v220_v15 = vld [vmem:[%s1993_s14 + $0x130] sm:$0xff]  ;;  %v225_v25 = vld [vmem:[%s1993_s14 + $0x158] sm:$0xff]  ;;  %v234_v29 = vld [vmem:[%s1993_s14 + $0x1a0] sm:$0xff] }
  0x3f   : > { %466 = vadd.xlane.f32.xlu2 %v465_v16  ;;  %v350_v60 = vmul.f32 %v222_v44, %v222_v44  ;;  %v351_v61 = vmul.f32 %v223_v45, %v223_v45  ;;  %v337_v63 = vmul.f32 %v209_v51, %v209_v51  ;;  %v346_v5 = vmul.f32 %v218_v54, %v218_v54  ;;  %v235_v31 = vld [vmem:[%s1993_s14 + $0x1a8] sm:$0xff]  ;;  %v221_v42 = vld [vmem:[%s1993_s14 + $0x138] sm:$0xff]  ;;  %v230_v45 = vld [vmem:[%s1993_s14 + $0x180] sm:$0xff] }
  0x40   : > { %v469_v4 = vadd.f32 %v468_v48, %v336_v47  ;;  %v347_v6 = vmul.f32 %v219_v55, %v219_v55  ;;  %v480_v9 = vadd.f32 %v479_v50, %v345_v49  ;;  %v356_v12 = vmul.f32 %v228_v59, %v228_v59  ;;  %v240_v49 = vld [vmem:[%s1993_s14 + $0x1d0] sm:$0xff] }
  0x41   : > { %456 = vadd.xlane.f32.xlu1 %v455_v23  ;;  %v493_v13 = vadd.f32 %v355_v53, %v354_v52  ;;  %v475_v16 = vadd.f32 %v474_v58, %v341_v56  ;;  %v352_v21 = vmul.f32 %v224_v62, %v224_v62  ;;  %v488_v22 = vadd.f32 %v351_v61, %v350_v60  ;;  %v238_v23 = vld [vmem:[%s1993_s14 + $0x1c0] sm:$0xff]  ;;  %v236_v52 = vld [vmem:[%s1993_s14 + $0x1b0] sm:$0xff] }
  0x42   : > { %446 = vadd.xlane.f32.xlu0 %v445_v46  ;;  %v470_v33 = vadd.f32 %v469_v4, %v337_v63  ;;  %v348_v36 = vmul.f32 %v220_v15, %v220_v15  ;;  %v483_v37 = vadd.f32 %v347_v6, %v346_v5  ;;  %v357_v38 = vmul.f32 %v229_v17, %v229_v17  ;;  %v231_v46 = vld [vmem:[%s1993_s14 + $0x188] sm:$0xff]  ;;  %v232_v61 = vld [vmem:[%s1993_s14 + $0x190] sm:$0xff]  ;;  %v241_v63 = vld [vmem:[%s1993_s14 + $0x1d8] sm:$0xff] }
  0x43   : > { %v494_v41 = vadd.f32 %v493_v13, %v356_v12  ;;  %v366_v43 = vmul.f32 %v238_v23, %v238_v23  ;;  %v367_v44 = vmul.f32 %v239_v24, %v239_v24  ;;  %v353_v47 = vmul.f32 %v225_v25, %v225_v25  ;;  %v250_v6 = vld [vmem:[%s1993_s14 + $0x220] sm:$0xff]  ;;  %v237_v12 = vld [vmem:[%s1993_s14 + $0x1b8] sm:$0xff]  ;;  %v247_v15 = vld [vmem:[%s1993_s14 + $0x208] sm:$0xff] }
  0x44   : > { %v489_v48 = vadd.f32 %v488_v22, %v352_v21  ;;  %v362_v50 = vmul.f32 %v234_v29, %v234_v29  ;;  %v363_v51 = vmul.f32 %v235_v31, %v235_v31  ;;  %v349_v53 = vmul.f32 %v221_v42, %v221_v42  ;;  %v246_v13 = vld [vmem:[%s1993_s14 + $0x200] sm:$0xff]  ;;  %v233_v24 = vld [vmem:[%s1993_s14 + $0x198] sm:$0xff] }
  0x45   : > { %v484_v54 = vadd.f32 %v483_v37, %v348_v36  ;;  %v358_v55 = vmul.f32 %v230_v45, %v230_v45  ;;  %v359_v56 = vmul.f32 %v231_v46, %v231_v46  ;;  %v495_v58 = vadd.f32 %v494_v41, %v357_v38  ;;  %v242_v31 = vld [vmem:[%s1993_s14 + $0x1e0] sm:$0xff]  ;;  %v252_v38 = vld [vmem:[%s1993_s14 + $0x230] sm:$0xff] }
  0x46   : > { %v368_v59 = vmul.f32 %v240_v49, %v240_v49  ;;  %v508_v60 = vadd.f32 %v367_v44, %v366_v43  ;;  %v490_v62 = vadd.f32 %v489_v48, %v353_v47  ;;  %v364_v4 = vmul.f32 %v236_v52, %v236_v52  ;;  %v248_v43 = vld [vmem:[%s1993_s14 + $0x210] sm:$0xff] }
  0x47   : > { %481 = vadd.xlane.f32.xlu2 %v480_v9  ;;  %v503_v5 = vadd.f32 %v363_v51, %v362_v50  ;;  %v251_v9 = vld [vmem:[%s1993_s14 + $0x228] sm:$0xff]  ;;  %v360_v17 = vmul.f32 %v232_v61, %v232_v61  ;;  %v498_v21 = vadd.f32 %v359_v56, %v358_v55  ;;  %v369_v22 = vmul.f32 %v241_v63, %v241_v63  ;;  %v244_v51 = vld [vmem:[%s1993_s14 + $0x1f0] sm:$0xff]  ;;  %v262_v56 = vld [vmem:[%s1993_s14 + $0x280] sm:$0xff] }
  0x48   : > { %v509_v23 = vadd.f32 %v508_v60, %v368_v59  ;;  %v378_v25 = vmul.f32 %v250_v6, %v250_v6  ;;  %v379_v29 = vmul.f32 %v251_v9, %v251_v9  ;;  %v365_v36 = vmul.f32 %v237_v12, %v237_v12  ;;  %v249_v59 = vld [vmem:[%s1993_s14 + $0x218] sm:$0xff]  ;;  %v258_v60 = vld [vmem:[%s1993_s14 + $0x260] sm:$0xff]  ;;  %v259_v61 = vld [vmem:[%s1993_s14 + $0x268] sm:$0xff] }
  0x49   : > { %476 = vadd.xlane.f32.xlu1 %v475_v16  ;;  %v485_v16 = vadd.f32 %v484_v54, %v349_v53  ;;  %v504_v37 = vadd.f32 %v503_v5, %v364_v4  ;;  %v374_v41 = vmul.f32 %v246_v13, %v246_v13  ;;  %v375_v42 = vmul.f32 %v247_v15, %v247_v15  ;;  %v253_v53 = vld [vmem:[%s1993_s14 + $0x238] sm:$0xff]  ;;  %v254_v15 = vld [vmem:[%s1993_s14 + $0x240] sm:$0xff] }
  0x4a   : > { %471 = vadd.xlane.f32.xlu0 %v470_v33  ;;  %v243_v33 = vld [vmem:[%s1993_s14 + $0x1e8] sm:$0xff]  ;;  %v361_v44 = vmul.f32 %v233_v24, %v233_v24  ;;  %v499_v45 = vadd.f32 %v498_v21, %v360_v17  ;;  %v370_v46 = vmul.f32 %v242_v31, %v242_v31  ;;  %v510_v48 = vadd.f32 %v509_v23, %v369_v22  ;;  %v245_v9 = vld [vmem:[%s1993_s14 + $0x1f8] sm:$0xff]  ;;  %v264_v22 = vld [vmem:[%s1993_s14 + $0x290] sm:$0xff] }
  0x4b   : > { %v371_v47 = vmul.f32 %v243_v33, %v243_v33  ;;  %v380_v49 = vmul.f32 %v252_v38, %v252_v38  ;;  %v523_v50 = vadd.f32 %v379_v29, %v378_v25  ;;  %v505_v52 = vadd.f32 %v504_v37, %v365_v36  ;;  %v260_v25 = vld [vmem:[%s1993_s14 + $0x270] sm:$0xff] }
  0x4c   : > { %v376_v54 = vmul.f32 %v248_v43, %v248_v43  ;;  %v518_v55 = vadd.f32 %v375_v42, %v374_v41  ;;  %v372_v63 = vmul.f32 %v244_v51, %v244_v51  ;;  %v381_v5 = vmul.f32 %v253_v53, %v253_v53  ;;  %v256_v42 = vld [vmem:[%s1993_s14 + $0x250] sm:$0xff]  ;;  %v271_v51 = vld [vmem:[%s1993_s14 + $0x2c8] sm:$0xff] }
  0x4d   : > { %v513_v4 = vadd.f32 %v371_v47, %v370_v46  ;;  %v524_v6 = vadd.f32 %v523_v50, %v380_v49  ;;  %v390_v12 = vmul.f32 %v262_v56, %v262_v56  ;;  %v377_v17 = vmul.f32 %v249_v59, %v249_v59  ;;  %v274_v47 = vld [vmem:[%s1993_s14 + $0x2e0] sm:$0xff]  ;;  %v261_v49 = vld [vmem:[%s1993_s14 + $0x278] sm:$0xff] }
  0x4e   : > { %v519_v21 = vadd.f32 %v518_v55, %v376_v54  ;;  %v386_v23 = vmul.f32 %v258_v60, %v258_v60  ;;  %v387_v24 = vmul.f32 %v259_v61, %v259_v61  ;;  %v373_v29 = vmul.f32 %v245_v9, %v245_v9  ;;  %v270_v50 = vld [vmem:[%s1993_s14 + $0x2c0] sm:$0xff] }
  0x4f   : > { %496 = vadd.xlane.f32.xlu2 %v495_v58  ;;  %v263_v58 = vld [vmem:[%s1993_s14 + $0x288] sm:$0xff]  ;;  %v514_v31 = vadd.f32 %v513_v4, %v372_v63  ;;  %v382_v33 = vmul.f32 %v254_v15, %v254_v15  ;;  %v525_v37 = vadd.f32 %v524_v6, %v381_v5  ;;  %v392_v38 = vmul.f32 %v264_v22, %v264_v22  ;;  %v266_v61 = vld [vmem:[%s1993_s14 + $0x2a0] sm:$0xff]  ;;  %v276_v5 = vld [vmem:[%s1993_s14 + $0x2f0] sm:$0xff] }
  0x50   : > { %v391_v13 = vmul.f32 %v263_v58, %v263_v58  ;;  %v520_v43 = vadd.f32 %v519_v21, %v377_v17  ;;  %v533_v46 = vadd.f32 %v387_v24, %v386_v23  ;;  %v384_v53 = vmul.f32 %v256_v42, %v256_v42  ;;  %v257_v58 = vld [vmem:[%s1993_s14 + $0x258] sm:$0xff]  ;;  %v268_v24 = vld [vmem:[%s1993_s14 + $0x2b0] sm:$0xff]  ;;  %v283_v42 = vld [vmem:[%s1993_s14 + $0x328] sm:$0xff] }
  0x51   : > { %491 = vadd.xlane.f32.xlu1 %v490_v62  ;;  %v500_v62 = vadd.f32 %v499_v45, %v361_v44  ;;  %v265_v44 = vld [vmem:[%s1993_s14 + $0x298] sm:$0xff]  ;;  %v388_v45 = vmul.f32 %v260_v25, %v260_v25  ;;  %v402_v59 = vmul.f32 %v274_v47, %v274_v47  ;;  %v389_v63 = vmul.f32 %v261_v49, %v261_v49 }
  0x52   : > { %486 = vadd.xlane.f32.xlu0 %v485_v16  ;;  %v255_v16 = vld [vmem:[%s1993_s14 + $0x248] sm:$0xff]  ;;  %v538_v41 = vadd.f32 %v391_v13, %v390_v12  ;;  %v393_v55 = vmul.f32 %v265_v44, %v265_v44  ;;  %v398_v6 = vmul.f32 %v270_v50, %v270_v50  ;;  %v399_v9 = vmul.f32 %v271_v51, %v271_v51  ;;  %v272_v12 = vld [vmem:[%s1993_s14 + $0x2d0] sm:$0xff]  ;;  %v278_v51 = vld [vmem:[%s1993_s14 + $0x300] sm:$0xff] }
  0x53   : > { %v383_v36 = vmul.f32 %v255_v16, %v255_v16  ;;  %v534_v4 = vadd.f32 %v533_v46, %v388_v45  ;;  %v385_v13 = vmul.f32 %v257_v58, %v257_v58  ;;  %v394_v16 = vmul.f32 %v266_v61, %v266_v61 }
  0x54   : > { %v539_v56 = vadd.f32 %v538_v41, %v392_v38  ;;  %v404_v22 = vmul.f32 %v276_v5, %v276_v5  ;;  %v273_v38 = vld [vmem:[%s1993_s14 + $0x2d8] sm:$0xff]  ;;  %v282_v41 = vld [vmem:[%s1993_s14 + $0x320] sm:$0xff]  ;;  %v396_v44 = vmul.f32 %v268_v24, %v268_v24  ;;  %v411_v58 = vmul.f32 %v283_v42, %v283_v42  ;;  %v295_v24 = vld [vmem:[%s1993_s14 + $0x388] sm:$0xff] }
  0x55   : > { %v528_v54 = vadd.f32 %v383_v36, %v382_v33  ;;  %v535_v25 = vadd.f32 %v534_v4, %v389_v63  ;;  %v548_v33 = vadd.f32 %v399_v9, %v398_v6  ;;  %v286_v36 = vld [vmem:[%s1993_s14 + $0x340] sm:$0xff]  ;;  %v280_v9 = vld [vmem:[%s1993_s14 + $0x310] sm:$0xff] }
  0x56   : > { %v540_v21 = vadd.f32 %v539_v56, %v393_v55  ;;  %v414_v49 = vmul.f32 %v286_v36, %v286_v36  ;;  %v288_v55 = vld [vmem:[%s1993_s14 + $0x350] sm:$0xff]  ;;  %v410_v56 = vmul.f32 %v282_v41, %v282_v41  ;;  %v290_v42 = vld [vmem:[%s1993_s14 + $0x360] sm:$0xff] }
  0x57   : > { %511 = vadd.xlane.f32.xlu2 %v510_v48  ;;  %v275_v48 = vld [vmem:[%s1993_s14 + $0x2e8] sm:$0xff]  ;;  %v529_v15 = vadd.f32 %v528_v54, %v384_v53  ;;  %v401_v53 = vmul.f32 %v273_v38, %v273_v38  ;;  %v416_v5 = vmul.f32 %v288_v55, %v288_v55 }
  0x58   : > { %v403_v60 = vmul.f32 %v275_v48, %v275_v48  ;;  %v269_v48 = vld [vmem:[%s1993_s14 + $0x2b8] sm:$0xff] }
  0x59   : > { %506 = vadd.xlane.f32.xlu1 %v505_v52  ;;  %v515_v52 = vadd.f32 %v514_v31, %v373_v29  ;;  %v277_v29 = vld [vmem:[%s1993_s14 + $0x2f8] sm:$0xff]  ;;  %v400_v31 = vmul.f32 %v272_v12, %v272_v12 }
  0x5a   : > { %501 = vadd.xlane.f32.xlu0 %v500_v62  ;;  %v267_v62 = vld [vmem:[%s1993_s14 + $0x2a8] sm:$0xff]  ;;  %v553_v23 = vadd.f32 %v403_v60, %v402_v59  ;;  %v405_v46 = vmul.f32 %v277_v29, %v277_v29  ;;  %v284_v59 = vld [vmem:[%s1993_s14 + $0x330] sm:$0xff]  ;;  %v397_v60 = vmul.f32 %v269_v48, %v269_v48  ;;  %v408_v29 = vmul.f32 %v280_v9, %v280_v9 }
  0x5b   : > { %v395_v17 = vmul.f32 %v267_v62, %v267_v62  ;;  %v549_v54 = vadd.f32 %v548_v33, %v400_v31  ;;  %v406_v62 = vmul.f32 %v278_v51, %v278_v51  ;;  %v423_v48 = vmul.f32 %v295_v24, %v295_v24 }
  0x5c   : > { %v554_v47 = vadd.f32 %v553_v23, %v404_v22  ;;  %v285_v22 = vld [vmem:[%s1993_s14 + $0x338] sm:$0xff]  ;;  %v294_v23 = vld [vmem:[%s1993_s14 + $0x380] sm:$0xff] }
  0x5d   : > { %v543_v45 = vadd.f32 %v395_v17, %v394_v16  ;;  %v550_v12 = vadd.f32 %v549_v54, %v401_v53  ;;  %v563_v16 = vadd.f32 %v411_v58, %v410_v56  ;;  %v298_v17 = vld [vmem:[%s1993_s14 + $0x3a0] sm:$0xff]  ;;  %v292_v58 = vld [vmem:[%s1993_s14 + $0x370] sm:$0xff] }
  0x5e   : > { %v555_v4 = vadd.f32 %v554_v47, %v405_v46  ;;  %v426_v38 = vmul.f32 %v298_v17, %v298_v17  ;;  %v300_v46 = vld [vmem:[%s1993_s14 + $0x3b0] sm:$0xff]  ;;  %v422_v47 = vmul.f32 %v294_v23, %v294_v23  ;;  %v420_v9 = vmul.f32 %v292_v58, %v292_v58  ;;  %v302_v17 = vld [vmem:[%s1993_s14 + $0x3c0] sm:$0xff] }
  0x5f   : > { %526 = vadd.xlane.f32.xlu2 %v525_v37  ;;  %v287_v37 = vld [vmem:[%s1993_s14 + $0x348] sm:$0xff]  ;;  %v544_v61 = vadd.f32 %v543_v45, %v396_v44  ;;  %v413_v44 = vmul.f32 %v285_v22, %v285_v22  ;;  %v428_v55 = vmul.f32 %v300_v46, %v300_v46 }
  0x60   : > { %v415_v50 = vmul.f32 %v287_v37, %v287_v37  ;;  %v281_v37 = vld [vmem:[%s1993_s14 + $0x318] sm:$0xff] }
  0x61   : > { %521 = vadd.xlane.f32.xlu1 %v520_v43  ;;  %v530_v43 = vadd.f32 %v529_v15, %v385_v13  ;;  %v289_v13 = vld [vmem:[%s1993_s14 + $0x358] sm:$0xff]  ;;  %v412_v15 = vmul.f32 %v284_v59, %v284_v59 }
  0x62   : > { %516 = vadd.xlane.f32.xlu0 %v515_v52  ;;  %v279_v52 = vld [vmem:[%s1993_s14 + $0x308] sm:$0xff]  ;;  %v568_v6 = vadd.f32 %v415_v50, %v414_v49  ;;  %v417_v33 = vmul.f32 %v289_v13, %v289_v13  ;;  %v296_v49 = vld [vmem:[%s1993_s14 + $0x390] sm:$0xff]  ;;  %v409_v50 = vmul.f32 %v281_v37, %v281_v37 }
  0x63   : > { %v407_v63 = vmul.f32 %v279_v52, %v279_v52  ;;  %v564_v45 = vadd.f32 %v563_v16, %v412_v15  ;;  %v418_v52 = vmul.f32 %v290_v42, %v290_v42  ;;  %v293_v16 = vld [vmem:[%s1993_s14 + $0x378] sm:$0xff] }
  0x64   : > { %v569_v36 = vadd.f32 %v568_v6, %v416_v5  ;;  %v307_v5 = vld [vmem:[%s1993_s14 + $0x3e8] sm:$0xff] }
  0x65   : > { %v558_v31 = vadd.f32 %v407_v63, %v406_v62  ;;  %v565_v59 = vadd.f32 %v564_v45, %v413_v44  ;;  %v578_v62 = vadd.f32 %v423_v48, %v422_v47  ;;  %v297_v63 = vld [vmem:[%s1993_s14 + $0x398] sm:$0xff] }
  0x66   : > { %v570_v54 = vadd.f32 %v569_v36, %v417_v33  ;;  %v425_v22 = vmul.f32 %v297_v63, %v297_v63  ;;  %v430_v36 = vmul.f32 %v302_v17, %v302_v17  ;;  %v309_v45 = vld [vmem:[%s1993_s14 + $0x3f8] sm:$0xff] }
  0x67   : > { %541 = vadd.xlane.f32.xlu2 %v540_v21  ;;  %v299_v21 = vld [vmem:[%s1993_s14 + $0x3a8] sm:$0xff]  ;;  %v559_v51 = vadd.f32 %v558_v31, %v408_v29  ;;  %v308_v29 = vld [vmem:[%s1993_s14 + $0x3f0] sm:$0xff]  ;;  %v421_v31 = vmul.f32 %v293_v16, %v293_v16 }
  0x68   : > { %v427_v41 = vmul.f32 %v299_v21, %v299_v21  ;;  %v303_v21 = vld [vmem:[%s1993_s14 + $0x3c8] sm:$0xff] }
  0x69   : > { %536 = vadd.xlane.f32.xlu1 %v535_v25  ;;  %v545_v25 = vadd.f32 %v544_v61, %v397_v60  ;;  %v301_v60 = vld [vmem:[%s1993_s14 + $0x3b8] sm:$0xff]  ;;  %v424_v61 = vmul.f32 %v296_v49, %v296_v49  ;;  %v560_v6 = vadd.f32 %v559_v51, %v409_v50  ;;  %v431_v37 = vmul.f32 %v303_v21, %v303_v21 }
  0x6a   : > { %531 = vadd.xlane.f32.xlu0 %v530_v43  ;;  %v291_v43 = vld [vmem:[%s1993_s14 + $0x368] sm:$0xff]  ;;  %v583_v56 = vadd.f32 %v427_v41, %v426_v38  ;;  %v429_v13 = vmul.f32 %v301_v60, %v301_v60  ;;  %v304_v41 = vld [vmem:[%s1993_s14 + $0x3d0] sm:$0xff]  ;;  %v305_v49 = vld [vmem:[%s1993_s14 + $0x3d8] sm:$0xff]  ;;  %v437_v50 = vmul.f32 %v309_v45, %v309_v45 }
  0x6b   : > { %v419_v53 = vmul.f32 %v291_v43, %v291_v43  ;;  %v579_v23 = vadd.f32 %v578_v62, %v424_v61  ;;  %v436_v43 = vmul.f32 %v308_v29, %v308_v29  ;;  %v432_v47 = vmul.f32 %v304_v41, %v304_v41  ;;  %v1117_v29 = vld [vmem:[#allocation5] sm:$0xf] }
  0x6c   : > { %v584_v15 = vadd.f32 %v583_v56, %v428_v55  ;;  %v588_v48 = vadd.f32 %v431_v37, %v430_v36  ;;  %v1874_v56 = vmov 512.0  }
  0x6d   : > { %v580_v42 = vadd.f32 %v579_v23, %v425_v22  ;;  %1567 = vrcp.f32 %v1874_v56 }
  0x6e   : > { %v585_v38 = vadd.f32 %v584_v15, %v429_v13 }
  0x6f   : > { %556 = vadd.xlane.f32.xlu2 %v555_v4  ;;  %v306_v4 = vld [vmem:[%s1993_s14 + $0x3e0] sm:$0xff] }
  0x70   : > { %v434_v24 = vmul.f32 %v306_v4, %v306_v4 }
  0x71   : > { %551 = vadd.xlane.f32.xlu1 %v550_v12  ;;  %v573_v12 = vadd.f32 %v419_v53, %v418_v52  ;;  %v433_v52 = vmul.f32 %v305_v49, %v305_v49  ;;  %v589_v53 = vadd.f32 %v588_v48, %v432_v47  ;;  %v2246_v47 = vperm.slane %v1117_v29, 2 }
  0x72   : > { %546 = vadd.xlane.f32.xlu0 %v545_v25  ;;  %v435_v25 = vmul.f32 %v307_v5, %v307_v5 }
  0x73   : > { %v574_v33 = vadd.f32 %v573_v12, %v420_v9  ;;  %v590_v55 = vadd.f32 %v589_v53, %v433_v52  ;;  %v1568_v58 = vpop.eup %1567 }
  0x74   : > { %v593_v44 = vadd.f32 %v435_v25, %v434_v24  ;;  %vm603_vm0 = vweird.f32 %v1568_v58 }
  0x75   : > { %v575_v46 = vadd.f32 %v574_v33, %v421_v31 }
  0x76   : > { %v594_v51 = vadd.f32 %v593_v44, %v436_v43  ;;  %v2241_v44 = vperm.slane %v1117_v29, 0 }
  0x77   : > { %571 = vadd.xlane.f32.xlu2 %v570_v54 }
  0x78   : > { %v595_v54 = vadd.f32 %v594_v51, %v437_v50  ;;  %v2250_v50 = vperm.slane %v1117_v29, 3 }
  0x79   : > { %566 = vadd.xlane.f32.xlu1 %v565_v59  ;;  %v599_v59 = vmul.f32 512.0, %v1568_v58 }
  0x7a   : > { %561 = vadd.xlane.f32.xlu0 %v560_v6 }
  0x7b   : > { %v600_v60 = vsub.f32 1.0, %v599_v59 }
  0x7d   : > { %v601_v61 = vmul.f32 %v1568_v58, %v600_v60 }
  0x7f   : > { %586 = vadd.xlane.f32.xlu2 %v585_v38  ;;  %v602_v62 = vadd.f32 %v1568_v58, %v601_v61 }
  0x81   : > { %581 = vadd.xlane.f32.xlu1 %v580_v42  ;;  %v2219_v63 = vsel %vm603_vm0, %v1568_v58, %v602_v62 }
  0x82   : > { %576 = vadd.xlane.f32.xlu0 %v575_v46  ;;  %v2244_v46 = vperm.slane %v1117_v29, 1 }
  0x89   : > { %596 = vadd.xlane.f32.xlu1 %v595_v54 }
  0x8a   : > { %591 = vadd.xlane.f32.xlu0 %v590_v55 }
  0xaa   : > { %v462_v4 = vpop.xlane.xlu2 %461 }
  0xab   : > { %v609_v5 = vmul.f32 %v2219_v63, %v462_v4 }
  0xac   : > { %v452_v6 = vpop.xlane.xlu1 %451 }
  0xad   : > { %v607_v9 = vmul.f32 %v2219_v63, %v452_v6  ;;  %v641_v12 = vadd.f32 1e-05, %v609_v5  ;;  %v442_v13 = vpop.xlane.xlu0 %441 }
  0xae   : > { %v605_v16 = vmul.f32 %v2219_v63, %v442_v13 }
  0xaf   : > { %v2223_v15 = vadd.f32 1e-05, %v607_v9  ;;  %1569 = vrsqrt.f32 %v641_v12  ;;  %vm715_vm1 = vweird.f32 %v641_v12 }
  0xb0   : > { %v2227_v17 = vadd.f32 1e-05, %v605_v16 }
  0xb1   : > { %1571 = vrsqrt.f32 %v2223_v15  ;;  %vm695_vm2 = vweird.f32 %v2223_v15 }
  0xb2   : > { %1573 = vrsqrt.f32 %v2227_v17  ;;  %v467_v21 = vpop.xlane.xlu2 %466  ;;  %vm675_vm4 = vweird.f32 %v2227_v17 }
  0xb3   : > { %v610_v22 = vmul.f32 %v2219_v63, %v467_v21 }
  0xb4   : > { %v457_v23 = vpop.xlane.xlu1 %456 }
  0xb5   : > { %v608_v24 = vmul.f32 %v2219_v63, %v457_v23  ;;  %v1570_v25 = vpop.eup %1569  ;;  %v2232_v31 = vadd.f32 1e-05, %v610_v22  ;;  %v447_v33 = vpop.xlane.xlu0 %446 }
  0xb6   : > { %v710_v37 = vmul.f32 %v1570_v25, %v641_v12  ;;  %v606_v41 = vmul.f32 %v2219_v63, %v447_v33  ;;  %vm716_vm3 = vweird.f32 %v1570_v25 }
  0xb7   : > { %v1572_v36 = vpop.eup %1571  ;;  %v2234_v38 = vadd.f32 1e-05, %v608_v24  ;;  %1575 = vrsqrt.f32 %v2232_v31  ;;  %vm725_vm7 = vweird.f32 %v2232_v31  ;;  %vm717_vm8 = vmor %vm715_vm1, %vm716_vm3 }
  0xb8   : > { %v690_v42 = vmul.f32 %v1572_v36, %v2223_v15  ;;  %v2239_v43 = vpop.eup %1573  ;;  %v711_v45 = vmul.f32 %v1570_v25, %v710_v37  ;;  %v2252_v52 = vadd.f32 1e-05, %v606_v41  ;;  %vm696_vm5 = vweird.f32 %v1572_v36 }
  0xb9   : > { %1577 = vrsqrt.f32 %v2234_v38  ;;  %v670_v49 = vmul.f32 %v2239_v43, %v2227_v17  ;;  %vm676_vm6 = vweird.f32 %v2239_v43  ;;  %vm697_vm10 = vmor %vm695_vm2, %vm696_vm5  ;;  %vm705_vm12 = vweird.f32 %v2234_v38 }
  0xba   : > { %v691_v48 = vmul.f32 %v1572_v36, %v690_v42  ;;  %v712_v51 = vmul.f32 0.5, %v711_v45  ;;  %v482_v53 = vpop.xlane.xlu2 %481  ;;  %1579 = vrsqrt.f32 %v2252_v52  ;;  %vm677_vm11 = vmor %vm675_vm4, %vm676_vm6  ;;  %vm685_vm15 = vweird.f32 %v2252_v52 }
  0xbb   : > { %v671_v55 = vmul.f32 %v2239_v43, %v670_v49  ;;  %v613_v56 = vmul.f32 %v2219_v63, %v482_v53 }
  0xbc   : > { %v692_v54 = vmul.f32 0.5, %v691_v48  ;;  %v477_v58 = vpop.xlane.xlu1 %476  ;;  %v713_v59 = vsub.f32 1.5, %v712_v51 }
  0xbd   : > { %v612_v60 = vmul.f32 %v2219_v63, %v477_v58  ;;  %v2259_v61 = vpop.eup %1575  ;;  %v672_v4 = vmul.f32 0.5, %v671_v55  ;;  %v2261_v5 = vadd.f32 1e-05, %v613_v56 }
  0xbe   : > { %v693_v62 = vsub.f32 1.5, %v692_v54  ;;  %v714_v9 = vmul.f32 %v1570_v25, %v713_v59  ;;  %v720_v13 = vmul.f32 %v2259_v61, %v2232_v31  ;;  %vm726_vm9 = vweird.f32 %v2259_v61 }
  0xbf   : > { %v2263_v6 = vpop.eup %1577  ;;  %v673_v21 = vsub.f32 1.5, %v672_v4  ;;  %1581 = vrsqrt.f32 %v2261_v5  ;;  %v2276_v29 = vadd.f32 1e-05, %v612_v60  ;;  %vm727_vm13 = vmor %vm725_vm7, %vm726_vm9  ;;  %vm755_vm2 = vweird.f32 %v2261_v5 }
  0xc0   : > { %v694_v16 = vmul.f32 %v1572_v36, %v693_v62  ;;  %v700_v22 = vmul.f32 %v2263_v6, %v2234_v38  ;;  %v718_v23 = vsel %vm717_vm8, %v1570_v25, %v714_v9  ;;  %v721_v24 = vmul.f32 %v2259_v61, %v720_v13  ;;  %v2292_v51 = vpop.eup %1579 }
  0xc1   : > { %v1005_v33 = vmul.f32 %v718_v23, %v2004_v0  ;;  %v1006_v12 = vmul.f32 %v718_v23, %v2007_v1  ;;  %v1007_v37 = vmul.f32 %v718_v23, %v2010_v2  ;;  %v1008_v41 = vmul.f32 %v718_v23, %v2013_v3 }
  0xc2   : > { %v698_v25 = vsel %vm697_vm10, %v1572_v36, %v694_v16  ;;  %v674_v42 = vmul.f32 %v2239_v43, %v673_v21  ;;  %v722_v45 = vmul.f32 0.5, %v721_v24  ;;  %v701_v48 = vmul.f32 %v2263_v6, %v700_v22 }
  0xc3   : > { %v1143_v49 = vmul.f32 %v2241_v44, %v1005_v33  ;;  %v1144_v0 = vmul.f32 %v2244_v46, %v1006_v12  ;;  %v1145_v1 = vmul.f32 %v2246_v47, %v1007_v37  ;;  %v1146_v2 = vmul.f32 %v2250_v50, %v1008_v41  ;;  %v497_v41 = vpop.xlane.xlu2 %496 }
  0xc4   : > { %v997_v3 = vmul.f32 %v698_v25, %v2022_v7  ;;  %v998_v15 = vmul.f32 %v698_v25, %v2025_v8  ;;  %v999_v36 = vmul.f32 %v698_v25, %v2030_v10  ;;  %v1000_v53 = vmul.f32 %v698_v25, %v2033_v11 }
  0xc5   : > { %v1263_v54 = vpack.c.bf16 %v1144_v0, %v1143_v49  ;;  %v1264_v55 = vpack.c.bf16 %v1146_v2, %v1145_v1  ;;  %v678_v56 = vsel %vm677_vm11, %v2239_v43, %v674_v42  ;;  %v723_v58 = vsub.f32 1.5, %v722_v45  ;;  %v2304_v59 = vpop.eup %1581 }
  0xc6   : > { %v1135_v7 = vmul.f32 %v2241_v44, %v997_v3  ;;  %v1136_v8 = vmul.f32 %v2244_v46, %v998_v15  ;;  %v1137_v10 = vmul.f32 %v2246_v47, %v999_v36  ;;  %v1138_v11 = vmul.f32 %v2250_v50, %v1000_v53 }
  0xc7   : > { %1327 = vst [vmem:[%s2310_s23 + $0x40] sm:$0xff] %v1263_v54  ;;  %v989_v17 = vmul.f32 %v678_v56, %v2040_v14  ;;  %v990_v43 = vmul.f32 %v678_v56, %v2047_v18  ;;  %v991_v60 = vmul.f32 %v678_v56, %v2050_v19  ;;  %v992_v62 = vmul.f32 %v678_v56, %v2053_v20  ;;  %v472_v18 = vpop.xlane.xlu0 %471 }
  0xc8   : > { %1328 = vst [vmem:[%s2310_s23 + $0x48] sm:$0xff] %v1264_v55  ;;  %v1259_v4 = vpack.c.bf16 %v1136_v8, %v1135_v7  ;;  %v1260_v9 = vpack.c.bf16 %v1138_v11, %v1137_v10  ;;  %v724_v13 = vmul.f32 %v2259_v61, %v723_v58  ;;  %v702_v16 = vmul.f32 0.5, %v701_v48 }
  0xc9   : > { %v1127_v21 = vmul.f32 %v2241_v44, %v989_v17  ;;  %v1128_v22 = vmul.f32 %v2244_v46, %v990_v43  ;;  %v1129_v23 = vmul.f32 %v2246_v47, %v991_v60  ;;  %v1130_v14 = vmul.f32 %v2250_v50, %v992_v62  ;;  %v1633_v62 = vld [vmem:[%s1993_s14 + $0x20] sm:$0xff] }
  0xca   : > { %1323 = vst [vmem:[%s2310_s23 + $0x20] sm:$0xff] %v1259_v4  ;;  %v728_v19 = vsel %vm727_vm13, %v2259_v61, %v724_v13  ;;  %v703_v20 = vsub.f32 1.5, %v702_v16  ;;  %vm706_vm14 = vweird.f32 %v2263_v6  ;;  %v680_v24 = vmul.f32 %v2292_v51, %v2252_v52  ;;  %v1635_v13 = vld [vmem:[%s1993_s14 + $0x30] sm:$0xff] }
  0xcb   : > { %1324 = vst [vmem:[%s2310_s23 + $0x28] sm:$0xff] %v1260_v9  ;;  %v1255_v33 = vpack.c.bf16 %v1128_v22, %v1127_v21  ;;  %v1256_v12 = vpack.c.bf16 %v1130_v14, %v1129_v23  ;;  %v1009_v31 = vmul.f32 %v728_v19, %v2064_v26  ;;  %v1010_v37 = vmul.f32 %v728_v19, %v2067_v27  ;;  %vm707_vm0 = vmor %vm705_vm12, %vm706_vm14  ;;  %v492_v27 = vpop.xlane.xlu1 %491  ;;  %v1634_v9 = vld [vmem:[%s1993_s14 + $0x28] sm:$0xff]  ;;  %v512_v22 = vpop.xlane.xlu2 %511 }
  0xcc   : > { %v1011_v25 = vmul.f32 %v728_v19, %v2070_v28  ;;  %v1012_v61 = vmul.f32 %v728_v19, %v2073_v30  ;;  %v704_v42 = vmul.f32 %v2263_v6, %v703_v20  ;;  %v681_v45 = vmul.f32 %v2292_v51, %v680_v24 }
  0xcd   : > { %1319 = vst [vmem:[%s2310_s23] sm:$0xff] %v1255_v33  ;;  %v1147_v48 = vmul.f32 %v2241_v44, %v1009_v31  ;;  %v1148_v49 = vmul.f32 %v2244_v46, %v1010_v37  ;;  %vm686_vm1 = vweird.f32 %v2292_v51  ;;  %v750_v26 = vmul.f32 %v2304_v59, %v2261_v5 }
  0xce   : > { %1320 = vst [vmem:[%s2310_s23 + $0x8] sm:$0xff] %v1256_v12  ;;  %v1149_v28 = vmul.f32 %v2246_v47, %v1011_v25  ;;  %v1150_v30 = vmul.f32 %v2250_v50, %v1012_v61  ;;  %v708_v0 = vsel %vm707_vm0, %v2263_v6, %v704_v42  ;;  %v682_v1 = vmul.f32 0.5, %v681_v45  ;;  %vm687_vm3 = vmor %vm685_vm15, %vm686_vm1  ;;  %v1636_v42 = vld [vmem:[%s1993_s14 + $0x100] sm:$0xff] }
  0xcf   : > { %v1265_v2 = vpack.c.bf16 %v1148_v49, %v1147_v48  ;;  %v1001_v38 = vmul.f32 %v708_v0, %v2082_v34  ;;  %v1002_v3 = vmul.f32 %v708_v0, %v2085_v35  ;;  %v1003_v15 = vmul.f32 %v708_v0, %v2090_v39  ;;  %v487_v10 = vpop.xlane.xlu0 %486  ;;  %v1637_v48 = vld [vmem:[%s1993_s14 + $0x108] sm:$0xff] }
  0xd0   : > { %v1266_v36 = vpack.c.bf16 %v1150_v30, %v1149_v28  ;;  %v1004_v53 = vmul.f32 %v708_v0, %v2093_v40  ;;  %v683_v54 = vsub.f32 1.5, %v682_v1  ;;  %v751_v55 = vmul.f32 %v2304_v59, %v750_v26  ;;  %v1638_v26 = vld [vmem:[%s1993_s14 + $0x110] sm:$0xff] }
  0xd1   : > { %1329 = vst [vmem:[%s2310_s23 + $0x50] sm:$0xff] %v1265_v2  ;;  %v1139_v56 = vmul.f32 %v2241_v44, %v1001_v38  ;;  %v1140_v58 = vmul.f32 %v2244_v46, %v1002_v3  ;;  %v1141_v6 = vmul.f32 %v2246_v47, %v1003_v15  ;;  %1583 = vrsqrt.f32 %v2276_v29 }
  0xd2   : > { %1330 = vst [vmem:[%s2310_s23 + $0x58] sm:$0xff] %v1266_v36  ;;  %v1142_v34 = vmul.f32 %v2250_v50, %v1004_v53  ;;  %v684_v35 = vmul.f32 %v2292_v51, %v683_v54  ;;  %v752_v39 = vmul.f32 0.5, %v751_v55  ;;  %vm756_vm4 = vweird.f32 %v2304_v59 }
  0xd3   : > { %v1261_v40 = vpack.c.bf16 %v1140_v58, %v1139_v56  ;;  %v611_v7 = vmul.f32 %v2219_v63, %v472_v18  ;;  %v616_v8 = vmul.f32 %v2219_v63, %v497_v41  ;;  %v615_v60 = vmul.f32 %v2219_v63, %v492_v27  ;;  %vm757_vm5 = vmor %vm755_vm2, %vm756_vm4  ;;  %v507_v12 = vpop.xlane.xlu1 %506 }
  0xd4   : > { %v1262_v11 = vpack.c.bf16 %v1142_v34, %v1141_v6  ;;  %v688_v17 = vsel %vm687_vm3, %v2292_v51, %v684_v35  ;;  %v753_v43 = vsub.f32 1.5, %v752_v39  ;;  %v614_v18 = vmul.f32 %v2219_v63, %v487_v10 }
  0xd5   : > { %1325 = vst [vmem:[%s2310_s23 + $0x30] sm:$0xff] %v1261_v40  ;;  %v993_v4 = vmul.f32 %v1633_v62, %v688_v17  ;;  %v994_v52 = vmul.f32 %v1634_v9, %v688_v17  ;;  %v995_v16 = vmul.f32 %v1635_v13, %v688_v17  ;;  %v996_v21 = vmul.f32 %v688_v17, %v2109_v57  ;;  %v527_v40 = vpop.xlane.xlu2 %526  ;;  %v1641_v62 = vld [vmem:[%s1993_s14 + $0xf0] sm:$0xff]  ;;  %v1642_v9 = vld [vmem:[%s1993_s14 + $0xf8] sm:$0xff] }
  0xd6   : > { %1326 = vst [vmem:[%s2310_s23 + $0x38] sm:$0xff] %v1262_v11  ;;  %v754_v23 = vmul.f32 %v2304_v59, %v753_v43  ;;  %v2384_v14 = vadd.f32 1e-05, %v611_v7  ;;  %v2386_v51 = vadd.f32 1e-05, %v616_v8  ;;  %v619_v41 = vmul.f32 %v2219_v63, %v512_v22  ;;  %v1639_v11 = vld [vmem:[%s1993_s14 + $0xe0] sm:$0xff] }
  0xd7   : > { %v1584_v19 = vpop.eup %1583  ;;  %v1131_v20 = vmul.f32 %v2241_v44, %v993_v4  ;;  %v1132_v24 = vmul.f32 %v2244_v46, %v994_v52  ;;  %v1133_v57 = vmul.f32 %v2246_v47, %v995_v16  ;;  %v1134_v33 = vmul.f32 %v2250_v50, %v996_v21  ;;  %v502_v58 = vpop.xlane.xlu0 %501  ;;  %v1640_v43 = vld [vmem:[%s1993_s14 + $0xe8] sm:$0xff] }
  0xd8   : > { %v758_v31 = vsel %vm757_vm5, %v2304_v59, %v754_v23  ;;  %v740_v37 = vmul.f32 %v1584_v19, %v2276_v29  ;;  %1585 = vrsqrt.f32 %v2384_v14  ;;  %v2412_v38 = vadd.f32 1e-05, %v615_v60 }
  0xd9   : > { %v1257_v25 = vpack.c.bf16 %v1132_v24, %v1131_v20  ;;  %v1258_v61 = vpack.c.bf16 %v1134_v33, %v1133_v57  ;;  %v1021_v45 = vmul.f32 %v1636_v42, %v758_v31  ;;  %v1022_v49 = vmul.f32 %v1637_v48, %v758_v31 }
  0xda   : > { %v1023_v5 = vmul.f32 %v1638_v26, %v758_v31  ;;  %v1024_v27 = vmul.f32 %v758_v31, %v2121_v32  ;;  %v741_v28 = vmul.f32 %v1584_v19, %v740_v37  ;;  %1587 = vrsqrt.f32 %v2386_v51 }
  0xdb   : > { %1321 = vst [vmem:[%s2310_s23 + $0x10] sm:$0xff] %v1257_v25  ;;  %v1159_v59 = vmul.f32 %v2241_v44, %v1021_v45  ;;  %v1160_v30 = vmul.f32 %v2244_v46, %v1022_v49  ;;  %v2414_v32 = vadd.f32 1e-05, %v614_v18  ;;  %v2416_v15 = vadd.f32 1e-05, %v619_v41 }
  0xdc   : > { %1322 = vst [vmem:[%s2310_s23 + $0x18] sm:$0xff] %v1258_v61  ;;  %v1161_v0 = vmul.f32 %v2246_v47, %v1023_v5  ;;  %v1162_v1 = vmul.f32 %v2250_v50, %v1024_v27  ;;  %v742_v2 = vmul.f32 0.5, %v741_v28  ;;  %v618_v36 = vmul.f32 %v2219_v63, %v507_v12 }
  0xdd   : > { %v1271_v3 = vpack.c.bf16 %v1160_v30, %v1159_v59  ;;  %vm746_vm6 = vweird.f32 %v1584_v19  ;;  %1589 = vrsqrt.f32 %v2412_v38  ;;  %vm745_vm7 = vweird.f32 %v2276_v29  ;;  %v522_v29 = vpop.xlane.xlu1 %521 }
  0xde   : > { %v2419_v53 = vpop.eup %1585  ;;  %v1272_v54 = vpack.c.bf16 %v1162_v1, %v1161_v0  ;;  %v743_v55 = vsub.f32 1.5, %v742_v2  ;;  %1591 = vrsqrt.f32 %v2414_v32  ;;  %v2429_v34 = vadd.f32 1e-05, %v618_v36  ;;  %vm747_vm8 = vmor %vm745_vm7, %vm746_vm6  ;;  %v1643_v1 = vld [vmem:[%s1993_s14 + $0xc0] sm:$0xff] }
  0xdf   : > { %1335 = vst [vmem:[%s2310_s23 + $0x80] sm:$0xff] %v1271_v3  ;;  %v730_v56 = vmul.f32 %v2419_v53, %v2384_v14  ;;  %1593 = vrsqrt.f32 %v2416_v15  ;;  %vm735_vm9 = vweird.f32 %v2384_v14  ;;  %vm736_vm10 = vweird.f32 %v2419_v53  ;;  %v1644_v3 = vld [vmem:[%s1993_s14 + $0xc8] sm:$0xff] }
  0xe0   : > { %1336 = vst [vmem:[%s2310_s23 + $0x88] sm:$0xff] %v1272_v54  ;;  %v744_v6 = vmul.f32 %v1584_v19, %v743_v55  ;;  %v2431_v35 = vpop.eup %1587  ;;  %vm785_vm11 = vweird.f32 %v2386_v51  ;;  %1595 = vrsqrt.f32 %v2429_v34  ;;  %v617_v10 = vmul.f32 %v2219_v63, %v502_v58  ;;  %vm737_vm14 = vmor %vm735_vm9, %vm736_vm10  ;;  %v1645_v54 = vld [vmem:[%s1993_s14 + $0xd0] sm:$0xff] }
  0xe1   : > { %v731_v39 = vmul.f32 %v2419_v53, %v730_v56  ;;  %v780_v8 = vmul.f32 %v2431_v35, %v2386_v51  ;;  %v2449_v22 = vmul.f32 %v2219_v63, %v527_v40  ;;  %v2452_v23 = vmul.f32 %v2219_v63, %v522_v29  ;;  %v1646_v56 = vld [vmem:[%s1993_s14 + $0xd8] sm:$0xff] }
  0xe2   : > { %v748_v7 = vsel %vm747_vm8, %v1584_v19, %v744_v6  ;;  %vm786_vm12 = vweird.f32 %v2431_v35  ;;  %vm775_vm13 = vweird.f32 %v2412_v38  ;;  %v2468_v42 = vadd.f32 1e-05, %v617_v10 }
  0xe3   : > { %v1017_v17 = vmul.f32 %v1639_v11, %v748_v7  ;;  %v1018_v60 = vmul.f32 %v1640_v43, %v748_v7  ;;  %v1019_v4 = vmul.f32 %v1641_v62, %v748_v7  ;;  %v1020_v52 = vmul.f32 %v1642_v9, %v748_v7  ;;  %v2445_v13 = vpop.eup %1589  ;;  %vm787_vm4 = vmor %vm785_vm11, %vm786_vm12  ;;  %v1647_v11 = vld [vmem:[%s1993_s14 + $0x160] sm:$0xff]  ;;  %v1648_v43 = vld [vmem:[%s1993_s14 + $0x168] sm:$0xff] }
  0xe4   : > { %v732_v16 = vmul.f32 0.5, %v731_v39  ;;  %v781_v21 = vmul.f32 %v2431_v35, %v780_v8  ;;  %v2454_v18 = vpop.eup %1591  ;;  %v770_v37 = vmul.f32 %v2445_v13, %v2412_v38  ;;  %vm776_vm15 = vweird.f32 %v2445_v13  ;;  %v1652_v38 = vld [vmem:[%s1993_s14 + $0x148] sm:$0xff] }
  0xe5   : > { %v1155_v19 = vmul.f32 %v2241_v44, %v1017_v17  ;;  %v1156_v20 = vmul.f32 %v2244_v46, %v1018_v60  ;;  %v1157_v24 = vmul.f32 %v2246_v47, %v1019_v4  ;;  %v1158_v57 = vmul.f32 %v2250_v50, %v1020_v52  ;;  %v2460_v33 = vpop.eup %1593  ;;  %v1649_v60 = vld [vmem:[%s1993_s14 + $0x170] sm:$0xff]  ;;  %v1650_v4 = vld [vmem:[%s1993_s14 + $0x178] sm:$0xff]  ;;  %vm777_vm5 = vmor %vm775_vm13, %vm776_vm15 }
  0xe6   : > { %v733_v12 = vsub.f32 1.5, %v732_v16  ;;  %v782_v31 = vmul.f32 0.5, %v781_v21  ;;  %v760_v61 = vmul.f32 %v2454_v18, %v2414_v32  ;;  %v2470_v45 = vpop.eup %1595  ;;  %v771_v26 = vmul.f32 %v2445_v13, %v770_v37 }
  0xe7   : > { %v1269_v41 = vpack.c.bf16 %v1156_v20, %v1155_v19  ;;  %v1270_v25 = vpack.c.bf16 %v1158_v57, %v1157_v24  ;;  %v810_v5 = vmul.f32 %v2460_v33, %v2416_v15  ;;  %vm765_vm0 = vweird.f32 %v2414_v32 }
  0xe8   : > { %v734_v48 = vmul.f32 %v2419_v53, %v733_v12  ;;  %v783_v49 = vsub.f32 1.5, %v782_v31  ;;  %v761_v27 = vmul.f32 %v2454_v18, %v760_v61  ;;  %vm766_vm1 = vweird.f32 %v2454_v18 }
  0xe9   : > { %1333 = vst [vmem:[%s2310_s23 + $0x70] sm:$0xff] %v1269_v41  ;;  %v800_v28 = vmul.f32 %v2470_v45, %v2429_v34  ;;  %v772_v30 = vmul.f32 0.5, %v771_v26  ;;  %v811_v0 = vmul.f32 %v2460_v33, %v810_v5  ;;  %vm815_vm2 = vweird.f32 %v2416_v15  ;;  %vm767_vm6 = vmor %vm765_vm0, %vm766_vm1  ;;  %v1653_v5 = vld [vmem:[%s1993_s14 + $0x150] sm:$0xff] }
  0xea   : > { %1334 = vst [vmem:[%s2310_s23 + $0x78] sm:$0xff] %v1270_v25  ;;  %v738_v59 = vsel %vm737_vm14, %v2419_v53, %v734_v48  ;;  %v784_v14 = vmul.f32 %v2431_v35, %v783_v49  ;;  %vm816_vm3 = vweird.f32 %v2460_v33  ;;  %v762_v39 = vmul.f32 0.5, %v761_v27  ;;  %v1651_v48 = vld [vmem:[%s1993_s14 + $0x140] sm:$0xff] }
  0xeb   : > { %v1013_v2 = vmul.f32 %v1643_v1, %v738_v59  ;;  %v1014_v36 = vmul.f32 %v1644_v3, %v738_v59  ;;  %v1015_v55 = vmul.f32 %v1645_v54, %v738_v59  ;;  %v1016_v53 = vmul.f32 %v1646_v56, %v738_v59  ;;  %v1656_v3 = vld [vmem:[%s1993_s14 + $0x128] sm:$0xff]  ;;  %v542_v54 = vpop.xlane.xlu2 %541  ;;  %vm817_vm7 = vmor %vm815_vm2, %vm816_vm3 }
  0xec   : > { %v788_v58 = vsel %vm787_vm4, %v2431_v35, %v784_v14  ;;  %v773_v6 = vsub.f32 1.5, %v772_v30  ;;  %v812_v40 = vmul.f32 0.5, %v811_v0  ;;  %v763_v21 = vsub.f32 1.5, %v762_v39 }
  0xed   : > { %v1151_v29 = vmul.f32 %v2241_v44, %v1013_v2  ;;  %v1152_v7 = vmul.f32 %v2244_v46, %v1014_v36  ;;  %v1153_v8 = vmul.f32 %v2246_v47, %v1015_v55  ;;  %v1154_v10 = vmul.f32 %v2250_v50, %v1016_v53  ;;  %v1655_v2 = vld [vmem:[%s1993_s14 + $0x120] sm:$0xff] }
  0xee   : > { %v1033_v17 = vmul.f32 %v1647_v11, %v788_v58  ;;  %v1034_v51 = vmul.f32 %v1648_v43, %v788_v58  ;;  %v1035_v62 = vmul.f32 %v1649_v60, %v788_v58  ;;  %v1036_v35 = vmul.f32 %v1650_v4, %v788_v58  ;;  %v1658_v58 = vld [vmem:[%s1993_s14 + $0x138] sm:$0xff]  ;;  %v1659_v43 = vld [vmem:[%s1993_s14 + $0x1c0] sm:$0xff]  ;;  %v1660_v60 = vld [vmem:[%s1993_s14 + $0x1c8] sm:$0xff] }
  0xef   : > { %v1267_v9 = vpack.c.bf16 %v1152_v7, %v1151_v29  ;;  %v1268_v52 = vpack.c.bf16 %v1154_v10, %v1153_v8  ;;  %v774_v16 = vmul.f32 %v2445_v13, %v773_v6  ;;  %v764_v31 = vmul.f32 %v2454_v18, %v763_v21  ;;  %v537_v8 = vpop.xlane.xlu1 %536  ;;  %v1661_v4 = vld [vmem:[%s1993_s14 + $0x1d0] sm:$0xff] }
  0xf0   : > { %v1171_v19 = vmul.f32 %v2241_v44, %v1033_v17  ;;  %v1172_v20 = vmul.f32 %v2244_v46, %v1034_v51  ;;  %v1173_v24 = vmul.f32 %v2246_v47, %v1035_v62  ;;  %v1174_v57 = vmul.f32 %v2250_v50, %v1036_v35 }
  0xf1   : > { %1331 = vst [vmem:[%s2310_s23 + $0x60] sm:$0xff] %v1267_v9  ;;  %v778_v12 = vsel %vm777_vm5, %v2445_v13, %v774_v16  ;;  %v813_v37 = vsub.f32 1.5, %v812_v40  ;;  %v801_v41 = vmul.f32 %v2470_v45, %v800_v28  ;;  %v517_v13 = vpop.xlane.xlu0 %516  ;;  %v1654_v28 = vld [vmem:[%s1993_s14 + $0x158] sm:$0xff]  ;;  %v768_v14 = vsel %vm767_vm6, %v2454_v18, %v764_v31  ;;  %v1657_v18 = vld [vmem:[%s1993_s14 + $0x130] sm:$0xff] }
  0xf2   : > { %1332 = vst [vmem:[%s2310_s23 + $0x68] sm:$0xff] %v1268_v52  ;;  %v1277_v25 = vpack.c.bf16 %v1172_v20, %v1171_v19  ;;  %v1278_v61 = vpack.c.bf16 %v1174_v57, %v1173_v24  ;;  %v1029_v49 = vmul.f32 %v1651_v48, %v778_v12  ;;  %v1030_v26 = vmul.f32 %v1652_v38, %v778_v12  ;;  %v1662_v9 = vld [vmem:[%s1993_s14 + $0x1d8] sm:$0xff] }
  0xf3   : > { %v1031_v27 = vmul.f32 %v1653_v5, %v778_v12  ;;  %v1032_v59 = vmul.f32 %v1654_v28, %v778_v12  ;;  %v814_v30 = vmul.f32 %v2460_v33, %v813_v37  ;;  %v1025_v32 = vmul.f32 %v1655_v2, %v768_v14  ;;  %v1663_v5 = vld [vmem:[%s1993_s14 + $0x1a0] sm:$0xff]  ;;  %v1664_v28 = vld [vmem:[%s1993_s14 + $0x1a8] sm:$0xff] }
  0xf4   : > { %1341 = vst [vmem:[%s2310_s23 + $0xb0] sm:$0xff] %v1277_v25  ;;  %v1167_v0 = vmul.f32 %v2241_v44, %v1029_v49  ;;  %v1168_v1 = vmul.f32 %v2244_v46, %v1030_v26  ;;  %v1026_v36 = vmul.f32 %v1656_v3, %v768_v14  ;;  %v1027_v53 = vmul.f32 %v1657_v18, %v768_v14 }
  0xf5   : > { %1342 = vst [vmem:[%s2310_s23 + $0xb8] sm:$0xff] %v1278_v61  ;;  %v1169_v55 = vmul.f32 %v2246_v47, %v1031_v27  ;;  %v1170_v56 = vmul.f32 %v2250_v50, %v1032_v59  ;;  %v1028_v6 = vmul.f32 %v1658_v58, %v768_v14  ;;  %v1163_v40 = vmul.f32 %v2241_v44, %v1025_v32  ;;  %v1665_v14 = vld [vmem:[%s1993_s14 + $0x1b0] sm:$0xff] }
  0xf6   : > { %v1275_v39 = vpack.c.bf16 %v1168_v1, %v1167_v0  ;;  %v1164_v29 = vmul.f32 %v2244_v46, %v1026_v36  ;;  %v818_v7 = vsel %vm817_vm7, %v2460_v33, %v814_v30  ;;  %v1165_v11 = vmul.f32 %v2246_v47, %v1027_v53  ;;  %v1666_v0 = vld [vmem:[%s1993_s14 + $0x1b8] sm:$0xff] }
  0xf7   : > { %v1276_v10 = vpack.c.bf16 %v1170_v56, %v1169_v55  ;;  %v1166_v17 = vmul.f32 %v2250_v50, %v1028_v6  ;;  %v1045_v15 = vmul.f32 %v1659_v43, %v818_v7  ;;  %v1046_v62 = vmul.f32 %v1660_v60, %v818_v7  ;;  %v552_v2 = vpop.xlane.xlu1 %551 }
  0xf8   : > { %1339 = vst [vmem:[%s2310_s23 + $0xa0] sm:$0xff] %v1275_v39  ;;  %v1273_v51 = vpack.c.bf16 %v1164_v29, %v1163_v40  ;;  %v1047_v35 = vmul.f32 %v1661_v4, %v818_v7  ;;  %v1048_v52 = vmul.f32 %v1662_v9, %v818_v7  ;;  %v802_v21 = vmul.f32 0.5, %v801_v41 }
  0xf9   : > { %1340 = vst [vmem:[%s2310_s23 + $0xa8] sm:$0xff] %v1276_v10  ;;  %v1274_v33 = vpack.c.bf16 %v1166_v17, %v1165_v11  ;;  %v1183_v16 = vmul.f32 %v2241_v44, %v1045_v15  ;;  %1597 = vrsqrt.f32 %v2468_v42  ;;  %v1184_v19 = vmul.f32 %v2244_v46, %v1046_v62  ;;  %v532_v48 = vpop.xlane.xlu0 %531 }
  0xfa   : > { %1337 = vst [vmem:[%s2310_s23 + $0x90] sm:$0xff] %v1273_v51  ;;  %v1185_v20 = vmul.f32 %v2246_v47, %v1047_v35  ;;  %v1186_v24 = vmul.f32 %v2250_v50, %v1048_v52  ;;  %vm806_vm8 = vweird.f32 %v2470_v45  ;;  %v803_v57 = vsub.f32 1.5, %v802_v21 }
  0xfb   : > { %1338 = vst [vmem:[%s2310_s23 + $0x98] sm:$0xff] %v1274_v33  ;;  %v2568_v12 = vadd.f32 1e-05, %v2449_v22  ;;  %v2571_v31 = vadd.f32 1e-05, %v2452_v23  ;;  %v620_v37 = vmul.f32 %v2219_v63, %v517_v13  ;;  %v1283_v41 = vpack.c.bf16 %v1184_v19, %v1183_v16  ;;  %v557_v23 = vpop.xlane.xlu2 %556 }
  0xfc   : > { %v1284_v25 = vpack.c.bf16 %v1186_v24, %v1185_v20  ;;  %v625_v61 = vmul.f32 %v2219_v63, %v542_v54  ;;  %v804_v49 = vmul.f32 %v2470_v45, %v803_v57  ;;  %vm805_vm9 = vweird.f32 %v2429_v34 }
  0xfd   : > { %1599 = vrsqrt.f32 %v2568_v12  ;;  %1347 = vst [vmem:[%s2310_s23 + $0xe0] sm:$0xff] %v1283_v41  ;;  %vm807_vm10 = vmor %vm805_vm9, %vm806_vm8  ;;  %v2580_v22 = vadd.f32 1e-05, %v620_v37  ;;  %v624_v34 = vmul.f32 %v2219_v63, %v537_v8  ;;  %v628_v3 = vmul.f32 %v2219_v63, %v557_v23  ;;  %v1667_v41 = vld [vmem:[%s1993_s14 + $0x180] sm:$0xff]  ;;  %v1670_v23 = vld [vmem:[%s1993_s14 + $0x198] sm:$0xff] }
  0xfe   : > { %1601 = vrsqrt.f32 %v2571_v31  ;;  %1348 = vst [vmem:[%s2310_s23 + $0xe8] sm:$0xff] %v1284_v25  ;;  %v808_v26 = vsel %vm807_vm10, %v2470_v45, %v804_v49  ;;  %v2586_v13 = vadd.f32 1e-05, %v625_v61  ;;  %v623_v45 = vmul.f32 %v2219_v63, %v532_v48  ;;  %v1669_v48 = vld [vmem:[%s1993_s14 + $0x190] sm:$0xff] }
  0xff   : > { %v2582_v38 = vpop.eup %1597  ;;  %v1041_v27 = vmul.f32 %v1663_v5, %v808_v26  ;;  %v1042_v59 = vmul.f32 %v1664_v28, %v808_v26  ;;  %v1043_v30 = vmul.f32 %v1665_v14, %v808_v26  ;;  %v1044_v1 = vmul.f32 %v1666_v0, %v808_v26 }
 0x100   : > { %v790_v32 = vmul.f32 %v2582_v38, %v2468_v42  ;;  %1603 = vrsqrt.f32 %v2580_v22  ;;  %vm795_vm11 = vweird.f32 %v2468_v42  ;;  %v627_v58 = vmul.f32 %v2219_v63, %v552_v2  ;;  %v1668_v42 = vld [vmem:[%s1993_s14 + $0x188] sm:$0xff] }
 0x101   : > { %v1179_v36 = vmul.f32 %v2241_v44, %v1041_v27  ;;  %v1180_v54 = vmul.f32 %v2244_v46, %v1042_v59  ;;  %v1181_v55 = vmul.f32 %v2246_v47, %v1043_v30  ;;  %v1182_v56 = vmul.f32 %v2250_v50, %v1044_v1  ;;  %v547_v15 = vpop.xlane.xlu0 %546 }
 0x102   : > { %v791_v53 = vmul.f32 %v2582_v38, %v790_v32  ;;  %1605 = vrsqrt.f32 %v2586_v13  ;;  %v2612_v7 = vadd.f32 1e-05, %v624_v34  ;;  %vm845_vm12 = vweird.f32 %v2568_v12 }
 0x103   : > { %v2602_v18 = vpop.eup %1599  ;;  %v1281_v39 = vpack.c.bf16 %v1180_v54, %v1179_v36  ;;  %v1282_v40 = vpack.c.bf16 %v1182_v56, %v1181_v55  ;;  %vm835_vm13 = vweird.f32 %v2571_v31  ;;  %vm796_vm14 = vweird.f32 %v2582_v38  ;;  %v1671_v54 = vld [vmem:[%s1993_s14 + $0x220] sm:$0xff]  ;;  %v1672_v56 = vld [vmem:[%s1993_s14 + $0x228] sm:$0xff] }
 0x104   : > { %v2608_v6 = vpop.eup %1601  ;;  %v840_v29 = vmul.f32 %v2602_v18, %v2568_v12  ;;  %v792_v8 = vmul.f32 0.5, %v791_v53  ;;  %v2621_v17 = vadd.f32 1e-05, %v623_v45  ;;  %v2623_v43 = vadd.f32 1e-05, %v628_v3  ;;  %vm797_vm1 = vmor %vm795_vm11, %vm796_vm14 }
 0x105   : > { %v830_v10 = vmul.f32 %v2608_v6, %v2571_v31  ;;  %1345 = vst [vmem:[%s2310_s23 + $0xd0] sm:$0xff] %v1281_v39  ;;  %vm846_vm15 = vweird.f32 %v2602_v18  ;;  %v2630_v4 = vadd.f32 1e-05, %v627_v58  ;;  %vm836_vm0 = vweird.f32 %v2608_v6 }
 0x106   : > { %v841_v11 = vmul.f32 %v2602_v18, %v840_v29  ;;  %v2625_v51 = vpop.eup %1603  ;;  %1346 = vst [vmem:[%s2310_s23 + $0xd8] sm:$0xff] %v1282_v40  ;;  %v793_v60 = vsub.f32 1.5, %v792_v8  ;;  %1607 = vrsqrt.f32 %v2612_v7  ;;  %v2641_v21 = vmul.f32 %v2219_v63, %v547_v15  ;;  %vm847_vm4 = vmor %vm845_vm12, %vm846_vm15  ;;  %v1675_v29 = vld [vmem:[%s1993_s14 + $0x200] sm:$0xff] }
 0x107   : > { %v831_v62 = vmul.f32 %v2608_v6, %v830_v10  ;;  %v820_v9 = vmul.f32 %v2625_v51, %v2580_v22  ;;  %1609 = vrsqrt.f32 %v2621_v17  ;;  %vm826_vm2 = vweird.f32 %v2625_v51  ;;  %vm837_vm5 = vmor %vm835_vm13, %vm836_vm0  ;;  %v1676_v10 = vld [vmem:[%s1993_s14 + $0x208] sm:$0xff] }
 0x108   : > { %v842_v35 = vmul.f32 0.5, %v841_v11  ;;  %v2636_v52 = vpop.eup %1605  ;;  %v794_v33 = vmul.f32 %v2582_v38, %v793_v60  ;;  %1611 = vrsqrt.f32 %v2623_v43  ;;  %vm825_vm3 = vweird.f32 %v2580_v22  ;;  %v1679_v22 = vld [vmem:[%s1993_s14 + $0x1e0] sm:$0xff] }
 0x109   : > { %v832_v16 = vmul.f32 0.5, %v831_v62  ;;  %v821_v20 = vmul.f32 %v2625_v51, %v820_v9  ;;  %v870_v24 = vmul.f32 %v2636_v52, %v2586_v13  ;;  %1613 = vrsqrt.f32 %v2630_v4  ;;  %v1677_v62 = vld [vmem:[%s1993_s14 + $0x210] sm:$0xff]  ;;  %v1678_v9 = vld [vmem:[%s1993_s14 + $0x218] sm:$0xff]  ;;  %vm827_vm8 = vmor %vm825_vm3, %vm826_vm2 }
 0x10a   : > { %v843_v19 = vsub.f32 1.5, %v842_v35  ;;  %v798_v57 = vsel %vm797_vm1, %v2582_v38, %v794_v33  ;;  %vm875_vm6 = vweird.f32 %v2586_v13  ;;  %vm876_vm7 = vweird.f32 %v2636_v52 }
 0x10b   : > { %v833_v37 = vsub.f32 1.5, %v832_v16  ;;  %v1037_v25 = vmul.f32 %v1667_v41, %v798_v57  ;;  %v1038_v61 = vmul.f32 %v1668_v42, %v798_v57  ;;  %v1039_v49 = vmul.f32 %v1669_v48, %v798_v57  ;;  %vm877_vm12 = vmor %vm875_vm6, %vm876_vm7 }
 0x10c   : > { %v1040_v26 = vmul.f32 %v1670_v23, %v798_v57  ;;  %v844_v34 = vmul.f32 %v2602_v18, %v843_v19  ;;  %v822_v5 = vmul.f32 0.5, %v821_v20  ;;  %v871_v27 = vmul.f32 %v2636_v52, %v870_v24  ;;  %v2666_v28 = vpop.eup %1607 }
 0x10d   : > { %v834_v38 = vmul.f32 %v2608_v6, %v833_v37  ;;  %v1175_v59 = vmul.f32 %v2241_v44, %v1037_v25  ;;  %v1176_v14 = vmul.f32 %v2244_v46, %v1038_v61  ;;  %v1177_v30 = vmul.f32 %v2246_v47, %v1039_v49  ;;  %v2678_v12 = vpop.eup %1609 }
 0x10e   : > { %v1178_v0 = vmul.f32 %v2250_v50, %v1040_v26  ;;  %v848_v1 = vsel %vm847_vm4, %v2602_v18, %v844_v34  ;;  %v823_v32 = vsub.f32 1.5, %v822_v5  ;;  %v872_v45 = vmul.f32 0.5, %v871_v27  ;;  %v2682_v3 = vpop.eup %1611  ;;  %v1673_v18 = vld [vmem:[%s1993_s14 + $0x230] sm:$0xff]  ;;  %v1680_v5 = vld [vmem:[%s1993_s14 + $0x1e8] sm:$0xff] }
 0x10f   : > { %v838_v2 = vsel %vm837_vm5, %v2608_v6, %v834_v38  ;;  %v1279_v31 = vpack.c.bf16 %v1176_v14, %v1175_v59  ;;  %v1057_v55 = vmul.f32 %v1671_v54, %v848_v1  ;;  %v1058_v53 = vmul.f32 %v1672_v56, %v848_v1  ;;  %v2686_v58 = vpop.eup %1613  ;;  %v1674_v6 = vld [vmem:[%s1993_s14 + $0x238] sm:$0xff]  ;;  %v1681_v59 = vld [vmem:[%s1993_s14 + $0x1f0] sm:$0xff] }
 0x110   : > { %v1280_v36 = vpack.c.bf16 %v1178_v0, %v1177_v30  ;;  %v1059_v39 = vmul.f32 %v1673_v18, %v848_v1  ;;  %v1060_v40 = vmul.f32 %v1674_v6, %v848_v1  ;;  %v1053_v8 = vmul.f32 %v1675_v29, %v838_v2  ;;  %v1682_v30 = vld [vmem:[%s1993_s14 + $0x1f8] sm:$0xff]  ;;  %v1683_v6 = vld [vmem:[%s1993_s14 + $0x280] sm:$0xff]  ;;  %v1684_v29 = vld [vmem:[%s1993_s14 + $0x288] sm:$0xff] }
 0x111   : > { %v1054_v11 = vmul.f32 %v1676_v10, %v838_v2  ;;  %1343 = vst [vmem:[%s2310_s23 + $0xc0] sm:$0xff] %v1279_v31  ;;  %v1195_v15 = vmul.f32 %v2241_v44, %v1057_v55  ;;  %v1196_v60 = vmul.f32 %v2244_v46, %v1058_v53  ;;  %v1055_v35 = vmul.f32 %v1677_v62, %v838_v2  ;;  %v1685_v10 = vld [vmem:[%s1993_s14 + $0x290] sm:$0xff] }
 0x112   : > { %v1056_v33 = vmul.f32 %v1678_v9, %v838_v2  ;;  %1344 = vst [vmem:[%s2310_s23 + $0xc8] sm:$0xff] %v1280_v36  ;;  %v1197_v16 = vmul.f32 %v2246_v47, %v1059_v39  ;;  %v1198_v19 = vmul.f32 %v2250_v50, %v1060_v40  ;;  %v1191_v20 = vmul.f32 %v2241_v44, %v1053_v8 }
 0x113   : > { %v1192_v24 = vmul.f32 %v2244_v46, %v1054_v11  ;;  %v1289_v57 = vpack.c.bf16 %v1196_v60, %v1195_v15  ;;  %v1193_v37 = vmul.f32 %v2246_v47, %v1055_v35  ;;  %v824_v25 = vmul.f32 %v2625_v51, %v823_v32  ;;  %v1686_v15 = vld [vmem:[%s1993_s14 + $0x298] sm:$0xff]  ;;  %v567_v35 = vpop.xlane.xlu1 %566 }
 0x114   : > { %v1194_v41 = vmul.f32 %v2250_v50, %v1056_v33  ;;  %v1290_v42 = vpack.c.bf16 %v1198_v19, %v1197_v16  ;;  %v873_v48 = vsub.f32 1.5, %v872_v45  ;;  %v860_v49 = vmul.f32 %v2666_v28, %v2612_v7 }
 0x115   : > { %v1287_v61 = vpack.c.bf16 %v1192_v24, %v1191_v20  ;;  %vm865_vm9 = vweird.f32 %v2612_v7  ;;  %1353 = vst [vmem:[%s2310_s23 + $0x110] sm:$0xff] %v1289_v57  ;;  %v828_v26 = vsel %vm827_vm8, %v2625_v51, %v824_v25  ;;  %vm866_vm10 = vweird.f32 %v2666_v28 }
 0x116   : > { %v1288_v23 = vpack.c.bf16 %v1194_v41, %v1193_v37  ;;  %v850_v34 = vmul.f32 %v2678_v12, %v2621_v17  ;;  %1354 = vst [vmem:[%s2310_s23 + $0x118] sm:$0xff] %v1290_v42  ;;  %v1049_v38 = vmul.f32 %v1679_v22, %v828_v26  ;;  %v1050_v27 = vmul.f32 %v1680_v5, %v828_v26  ;;  %vm867_vm14 = vmor %vm865_vm9, %vm866_vm10  ;;  %v1690_v22 = vld [vmem:[%s1993_s14 + $0x278] sm:$0xff]  ;;  %v1691_v5 = vld [vmem:[%s1993_s14 + $0x240] sm:$0xff] }
 0x117   : > { %v1051_v14 = vmul.f32 %v1681_v59, %v828_v26  ;;  %v1052_v0 = vmul.f32 %v1682_v30, %v828_v26  ;;  %1351 = vst [vmem:[%s2310_s23 + $0x100] sm:$0xff] %v1287_v61  ;;  %v874_v1 = vmul.f32 %v2636_v52, %v873_v48  ;;  %v861_v51 = vmul.f32 %v2666_v28, %v860_v49  ;;  %v1687_v61 = vld [vmem:[%s1993_s14 + $0x260] sm:$0xff]  ;;  %v1688_v49 = vld [vmem:[%s1993_s14 + $0x268] sm:$0xff]  ;;  %v1689_v26 = vld [vmem:[%s1993_s14 + $0x270] sm:$0xff] }
 0x118   : > { %v851_v2 = vmul.f32 %v2678_v12, %v850_v34  ;;  %vm856_vm11 = vweird.f32 %v2678_v12  ;;  %1352 = vst [vmem:[%s2310_s23 + $0x108] sm:$0xff] %v1288_v23  ;;  %v1187_v32 = vmul.f32 %v2241_v44, %v1049_v38  ;;  %v1188_v45 = vmul.f32 %v2244_v46, %v1050_v27  ;;  %v1694_v30 = vld [vmem:[%s1993_s14 + $0x258] sm:$0xff] }
 0x119   : > { %v1189_v31 = vmul.f32 %v2246_v47, %v1051_v14  ;;  %v1190_v36 = vmul.f32 %v2250_v50, %v1052_v0  ;;  %v878_v54 = vsel %vm877_vm12, %v2636_v52, %v874_v1  ;;  %v862_v55 = vmul.f32 0.5, %v861_v51  ;;  %v572_v52 = vpop.xlane.xlu2 %571 }
 0x11a   : > { %v852_v56 = vmul.f32 0.5, %v851_v2  ;;  %v900_v53 = vmul.f32 %v2682_v3, %v2623_v43  ;;  %v1285_v18 = vpack.c.bf16 %v1188_v45, %v1187_v32  ;;  %v1069_v40 = vmul.f32 %v1683_v6, %v878_v54 }
 0x11b   : > { %v1286_v39 = vpack.c.bf16 %v1190_v36, %v1189_v31  ;;  %v1070_v8 = vmul.f32 %v1684_v29, %v878_v54  ;;  %v1071_v11 = vmul.f32 %v1685_v10, %v878_v54  ;;  %v1072_v13 = vmul.f32 %v1686_v15, %v878_v54 }
 0x11c   : > { %v863_v60 = vsub.f32 1.5, %v862_v55  ;;  %v853_v62 = vsub.f32 1.5, %v852_v56  ;;  %1349 = vst [vmem:[%s2310_s23 + $0xf0] sm:$0xff] %v1285_v18  ;;  %v1207_v9 = vmul.f32 %v2241_v44, %v1069_v40  ;;  %vm855_vm13 = vweird.f32 %v2621_v17  ;;  %v562_v55 = vpop.xlane.xlu0 %561 }
 0x11d   : > { %v1208_v33 = vmul.f32 %v2244_v46, %v1070_v8  ;;  %v901_v16 = vmul.f32 %v2682_v3, %v900_v53  ;;  %1350 = vst [vmem:[%s2310_s23 + $0xf8] sm:$0xff] %v1286_v39  ;;  %v1209_v19 = vmul.f32 %v2246_v47, %v1071_v11  ;;  %v1210_v20 = vmul.f32 %v2250_v50, %v1072_v13  ;;  %vm857_vm15 = vmor %vm855_vm13, %vm856_vm11  ;;  %v2788_v11 = vpop.xlane.xlu1 %581 }
 0x11e   : > { %v864_v24 = vmul.f32 %v2666_v28, %v863_v60  ;;  %v854_v17 = vmul.f32 %v2678_v12, %v853_v62  ;;  %vm905_vm0 = vweird.f32 %v2623_v43  ;;  %vm906_vm1 = vweird.f32 %v2682_v3  ;;  %v1696_v43 = vld [vmem:[%s1993_s14 + $0x2e8] sm:$0xff] }
 0x11f   : > { %v1295_v57 = vpack.c.bf16 %v1208_v33, %v1207_v9  ;;  %v902_v37 = vmul.f32 0.5, %v901_v16  ;;  %v1296_v41 = vpack.c.bf16 %v1210_v20, %v1209_v19  ;;  %v890_v42 = vmul.f32 %v2686_v58, %v2630_v4  ;;  %vm907_vm2 = vmor %vm905_vm0, %vm906_vm1  ;;  %v1695_v16 = vld [vmem:[%s1993_s14 + $0x2e0] sm:$0xff] }
 0x120   : > { %v868_v7 = vsel %vm867_vm14, %v2666_v28, %v864_v24  ;;  %v858_v25 = vsel %vm857_vm15, %v2678_v12, %v854_v17  ;;  %v1692_v28 = vld [vmem:[%s1993_s14 + $0x248] sm:$0xff]  ;;  %v1693_v12 = vld [vmem:[%s1993_s14 + $0x250] sm:$0xff]  ;;  %v2785_v29 = vadd.f32 1e-05, %v2641_v21  ;;  %v631_v8 = vmul.f32 %v2219_v63, %v572_v52 }
 0x121   : > { %1359 = vst [vmem:[%s2310_s23 + $0x140] sm:$0xff] %v1295_v57  ;;  %v1065_v48 = vmul.f32 %v1687_v61, %v868_v7  ;;  %v1066_v23 = vmul.f32 %v1688_v49, %v868_v7  ;;  %v1067_v34 = vmul.f32 %v1689_v26, %v868_v7  ;;  %v1068_v38 = vmul.f32 %v1690_v22, %v868_v7  ;;  %v587_v10 = vpop.xlane.xlu2 %586  ;;  %v1697_v24 = vld [vmem:[%s1993_s14 + $0x2f0] sm:$0xff]  ;;  %v1698_v57 = vld [vmem:[%s1993_s14 + $0x2f8] sm:$0xff] }
 0x122   : > { %1360 = vst [vmem:[%s2310_s23 + $0x148] sm:$0xff] %v1296_v41  ;;  %v1061_v27 = vmul.f32 %v1691_v5, %v858_v25  ;;  %v1062_v59 = vmul.f32 %v1692_v28, %v858_v25  ;;  %v1063_v14 = vmul.f32 %v1693_v12, %v858_v25  ;;  %v1064_v0 = vmul.f32 %v1694_v30, %v858_v25 }
 0x123   : > { %v1203_v1 = vmul.f32 %v2241_v44, %v1065_v48  ;;  %v1204_v51 = vmul.f32 %v2244_v46, %v1066_v23  ;;  %v1205_v2 = vmul.f32 %v2246_v47, %v1067_v34  ;;  %v1206_v32 = vmul.f32 %v2250_v50, %v1068_v38  ;;  %v1699_v34 = vld [vmem:[%s1993_s14 + $0x2c0] sm:$0xff]  ;;  %v1700_v38 = vld [vmem:[%s1993_s14 + $0x2c8] sm:$0xff] }
 0x124   : > { %v1199_v45 = vmul.f32 %v2241_v44, %v1061_v27  ;;  %v1200_v31 = vmul.f32 %v2244_v46, %v1062_v59  ;;  %v1201_v36 = vmul.f32 %v2246_v47, %v1063_v14  ;;  %v1202_v54 = vmul.f32 %v2250_v50, %v1064_v0  ;;  %v1701_v27 = vld [vmem:[%s1993_s14 + $0x2d0] sm:$0xff]  ;;  %v1702_v59 = vld [vmem:[%s1993_s14 + $0x2d8] sm:$0xff]  ;;  %v577_v0 = vpop.xlane.xlu0 %576 }
 0x125   : > { %v1293_v56 = vpack.c.bf16 %v1204_v51, %v1203_v1  ;;  %v1294_v53 = vpack.c.bf16 %v1206_v32, %v1205_v2  ;;  %v903_v18 = vsub.f32 1.5, %v902_v37  ;;  %v891_v39 = vmul.f32 %v2686_v58, %v890_v42  ;;  %v597_v1 = vpop.xlane.xlu1 %596 }
 0x126   : > { %v1291_v6 = vpack.c.bf16 %v1200_v31, %v1199_v45  ;;  %v1292_v40 = vpack.c.bf16 %v1202_v54, %v1201_v36  ;;  %v630_v60 = vmul.f32 %v2219_v63, %v567_v35  ;;  %v629_v62 = vmul.f32 %v2219_v63, %v562_v55 }
 0x127   : > { %1357 = vst [vmem:[%s2310_s23 + $0x130] sm:$0xff] %v1293_v56  ;;  %v904_v15 = vmul.f32 %v2682_v3, %v903_v18  ;;  %v892_v13 = vmul.f32 0.5, %v891_v39  ;;  %vm896_vm3 = vweird.f32 %v2686_v58  ;;  %1615 = vrsqrt.f32 %v2785_v29 }
 0x128   : > { %1358 = vst [vmem:[%s2310_s23 + $0x138] sm:$0xff] %v1294_v53  ;;  %v2801_v21 = vadd.f32 1e-05, %v631_v8  ;;  %v2805_v9 = vadd.f32 1e-05, %v630_v60  ;;  %v634_v33 = vmul.f32 %v2219_v63, %v587_v10  ;;  %vm895_vm4 = vweird.f32 %v2630_v4 }
 0x129   : > { %1355 = vst [vmem:[%s2310_s23 + $0x120] sm:$0xff] %v1291_v6  ;;  %v908_v52 = vsel %vm907_vm2, %v2682_v3, %v904_v15  ;;  %v893_v35 = vsub.f32 1.5, %v892_v13  ;;  %v2816_v3 = vadd.f32 1e-05, %v629_v62  ;;  %vm897_vm5 = vmor %vm895_vm4, %vm896_vm3  ;;  %vm885_vm6 = vweird.f32 %v2785_v29 }
 0x12a   : > { %1356 = vst [vmem:[%s2310_s23 + $0x128] sm:$0xff] %v1292_v40  ;;  %v1081_v19 = vmul.f32 %v1695_v16, %v908_v52  ;;  %v1082_v20 = vmul.f32 %v1696_v43, %v908_v52  ;;  %v1083_v17 = vmul.f32 %v1697_v24, %v908_v52  ;;  %v1084_v37 = vmul.f32 %v1698_v57, %v908_v52  ;;  %v1704_v57 = vld [vmem:[%s1993_s14 + $0x2a8] sm:$0xff] }
 0x12b   : > { %v894_v41 = vmul.f32 %v2686_v58, %v893_v35  ;;  %1617 = vrsqrt.f32 %v2801_v21  ;;  %v2826_v48 = vadd.f32 1e-05, %v634_v33  ;;  %v633_v54 = vmul.f32 %v2219_v63, %v2788_v11 }
 0x12c   : > { %v1219_v7 = vmul.f32 %v2241_v44, %v1081_v19  ;;  %v1220_v25 = vmul.f32 %v2244_v46, %v1082_v20  ;;  %v1221_v42 = vmul.f32 %v2246_v47, %v1083_v17  ;;  %v1222_v61 = vmul.f32 %v2250_v50, %v1084_v37  ;;  %v1703_v17 = vld [vmem:[%s1993_s14 + $0x2a0] sm:$0xff] }
 0x12d   : > { %v898_v4 = vsel %vm897_vm5, %v2686_v58, %v894_v41  ;;  %1619 = vrsqrt.f32 %v2805_v9  ;;  %v1616_v49 = vpop.eup %1615  ;;  %v632_v18 = vmul.f32 %v2219_v63, %v577_v0  ;;  %v636_v39 = vmul.f32 %v2219_v63, %v597_v1  ;;  %v1705_v41 = vld [vmem:[%s1993_s14 + $0x2b0] sm:$0xff]  ;;  %v1708_v1 = vld [vmem:[%s1993_s14 + $0x348] sm:$0xff] }
 0x12e   : > { %v1301_v23 = vpack.c.bf16 %v1220_v25, %v1219_v7  ;;  %v1302_v26 = vpack.c.bf16 %v1222_v61, %v1221_v42  ;;  %v1077_v22 = vmul.f32 %v1699_v34, %v898_v4  ;;  %v1078_v5 = vmul.f32 %v1700_v38, %v898_v4  ;;  %v1706_v25 = vld [vmem:[%s1993_s14 + $0x2b8] sm:$0xff] }
 0x12f   : > { %v1079_v28 = vmul.f32 %v1701_v27, %v898_v4  ;;  %v1080_v12 = vmul.f32 %v1702_v59, %v898_v4  ;;  %v880_v14 = vmul.f32 %v1616_v49, %v2785_v29  ;;  %1621 = vrsqrt.f32 %v2816_v3 }
 0x130   : > { %1365 = vst [vmem:[%s2310_s23 + $0x170] sm:$0xff] %v1301_v23  ;;  %v1215_v58 = vmul.f32 %v2241_v44, %v1077_v22  ;;  %v1216_v30 = vmul.f32 %v2244_v46, %v1078_v5  ;;  %1623 = vrsqrt.f32 %v2826_v48  ;;  %vm935_vm7 = vweird.f32 %v2801_v21 }
 0x131   : > { %v2837_v51 = vpop.eup %1617  ;;  %1366 = vst [vmem:[%s2310_s23 + $0x178] sm:$0xff] %v1302_v26  ;;  %v1217_v2 = vmul.f32 %v2246_v47, %v1079_v28  ;;  %v1218_v32 = vmul.f32 %v2250_v50, %v1080_v12  ;;  %v881_v45 = vmul.f32 %v1616_v49, %v880_v14  ;;  %v2857_v8 = vadd.f32 1e-05, %v633_v54 }
 0x132   : > { %v1299_v31 = vpack.c.bf16 %v1216_v30, %v1215_v58  ;;  %v930_v36 = vmul.f32 %v2837_v51, %v2801_v21  ;;  %vm886_vm8 = vweird.f32 %v1616_v49  ;;  %v2860_v11 = vadd.f32 1e-05, %v632_v18  ;;  %v1707_v30 = vld [vmem:[%s1993_s14 + $0x340] sm:$0xff] }
 0x133   : > { %v2848_v55 = vpop.eup %1619  ;;  %v1300_v56 = vpack.c.bf16 %v1218_v32, %v1217_v2  ;;  %v882_v53 = vmul.f32 0.5, %v881_v45  ;;  %v2862_v15 = vadd.f32 1e-05, %v636_v39  ;;  %vm936_vm9 = vweird.f32 %v2837_v51  ;;  %vm887_vm12 = vmor %vm885_vm6, %vm886_vm8  ;;  %v1709_v32 = vld [vmem:[%s1993_s14 + $0x350] sm:$0xff] }
 0x134   : > { %1363 = vst [vmem:[%s2310_s23 + $0x160] sm:$0xff] %v1299_v31  ;;  %v931_v6 = vmul.f32 %v2837_v51, %v930_v36  ;;  %v920_v40 = vmul.f32 %v2848_v55, %v2805_v9  ;;  %vm925_vm10 = vweird.f32 %v2805_v9  ;;  %vm926_vm11 = vweird.f32 %v2848_v55  ;;  %vm937_vm15 = vmor %vm935_vm7, %vm936_vm9  ;;  %v1710_v31 = vld [vmem:[%s1993_s14 + $0x358] sm:$0xff]  ;;  %v1711_v9 = vld [vmem:[%s1993_s14 + $0x320] sm:$0xff] }
 0x135   : > { %1364 = vst [vmem:[%s2310_s23 + $0x168] sm:$0xff] %v1300_v56  ;;  %v883_v10 = vsub.f32 1.5, %v882_v53  ;;  %v2864_v13 = vpop.eup %1621  ;;  %1625 = vrsqrt.f32 %v2857_v8  ;;  %vm915_vm13 = vweird.f32 %v2816_v3  ;;  %vm965_vm0 = vweird.f32 %v2826_v48  ;;  %vm927_vm2 = vmor %vm925_vm10, %vm926_vm11 }
 0x136   : > { %v932_v60 = vmul.f32 0.5, %v931_v6  ;;  %v921_v62 = vmul.f32 %v2848_v55, %v920_v40  ;;  %v2869_v52 = vpop.eup %1623  ;;  %v910_v33 = vmul.f32 %v2864_v13, %v2816_v3  ;;  %1627 = vrsqrt.f32 %v2860_v11  ;;  %v1712_v6 = vld [vmem:[%s1993_s14 + $0x328] sm:$0xff]  ;;  %v592_v3 = vpop.xlane.xlu0 %591 }
 0x137   : > { %v884_v35 = vmul.f32 %v1616_v49, %v883_v10  ;;  %v960_v43 = vmul.f32 %v2869_v52, %v2826_v48  ;;  %vm916_vm14 = vweird.f32 %v2864_v13  ;;  %1629 = vrsqrt.f32 %v2862_v15  ;;  %v1721_v48 = vld [vmem:[%s1993_s14 + $0x3b0] sm:$0xff] }
 0x138   : > { %v933_v16 = vsub.f32 1.5, %v932_v60  ;;  %v922_v19 = vmul.f32 0.5, %v921_v62  ;;  %v911_v24 = vmul.f32 %v2864_v13, %v910_v33  ;;  %vm966_vm1 = vweird.f32 %v2869_v52  ;;  %v1713_v62 = vld [vmem:[%s1993_s14 + $0x330] sm:$0xff]  ;;  %vm917_vm3 = vmor %vm915_vm13, %vm916_vm14 }
 0x139   : > { %v888_v20 = vsel %vm887_vm12, %v1616_v49, %v884_v35  ;;  %v961_v49 = vmul.f32 %v2869_v52, %v960_v43  ;;  %v1714_v35 = vld [vmem:[%s1993_s14 + $0x338] sm:$0xff]  ;;  %vm955_vm4 = vweird.f32 %v2857_v8  ;;  %vm967_vm5 = vmor %vm965_vm0, %vm966_vm1  ;;  %vm945_vm9 = vweird.f32 %v2860_v11 }
 0x13a   : > { %v1073_v29 = vmul.f32 %v1703_v17, %v888_v20  ;;  %v1074_v37 = vmul.f32 %v1704_v57, %v888_v20  ;;  %v1075_v7 = vmul.f32 %v1705_v41, %v888_v20  ;;  %v1076_v42 = vmul.f32 %v1706_v25, %v888_v20  ;;  %v1715_v57 = vld [vmem:[%s1993_s14 + $0x300] sm:$0xff] }
 0x13b   : > { %v934_v61 = vmul.f32 %v2837_v51, %v933_v16  ;;  %v923_v4 = vsub.f32 1.5, %v922_v19  ;;  %v912_v23 = vmul.f32 0.5, %v911_v24  ;;  %v2898_v5 = vpop.eup %1625  ;;  %v2902_v12 = vmul.f32 0.5, %v961_v49 }
 0x13c   : > { %v1211_v26 = vmul.f32 %v2241_v44, %v1073_v29  ;;  %v1212_v34 = vmul.f32 %v2244_v46, %v1074_v37  ;;  %v1213_v22 = vmul.f32 %v2246_v47, %v1075_v7  ;;  %v1214_v38 = vmul.f32 %v2250_v50, %v1076_v42  ;;  %v2906_v14 = vpop.eup %1627  ;;  %v1716_v7 = vld [vmem:[%s1993_s14 + $0x308] sm:$0xff]  ;;  %v1717_v42 = vld [vmem:[%s1993_s14 + $0x310] sm:$0xff] }
 0x13d   : > { %v938_v27 = vsel %vm937_vm15, %v2837_v51, %v934_v61  ;;  %v924_v28 = vmul.f32 %v2848_v55, %v923_v4  ;;  %v913_v59 = vsub.f32 1.5, %v912_v23  ;;  %v2914_v2 = vpop.eup %1629  ;;  %v1718_v4 = vld [vmem:[%s1993_s14 + $0x318] sm:$0xff]  ;;  %vm956_vm6 = vweird.f32 %v2898_v5 }
 0x13e   : > { %v1297_v21 = vpack.c.bf16 %v1212_v34, %v1211_v26  ;;  %v1298_v58 = vpack.c.bf16 %v1214_v38, %v1213_v22  ;;  %v1093_v0 = vmul.f32 %v1707_v30, %v938_v27  ;;  %v1094_v51 = vmul.f32 %v1708_v1, %v938_v27  ;;  %vm957_vm8 = vmor %vm955_vm4, %vm956_vm6 }
 0x13f   : > { %v1095_v45 = vmul.f32 %v1709_v32, %v938_v27  ;;  %v1096_v36 = vmul.f32 %v1710_v31, %v938_v27  ;;  %v928_v54 = vsel %vm927_vm2, %v2848_v55, %v924_v28  ;;  %v914_v56 = vmul.f32 %v2864_v13, %v913_v59  ;;  %v1719_v32 = vld [vmem:[%s1993_s14 + $0x3a0] sm:$0xff]  ;;  %v1720_v31 = vld [vmem:[%s1993_s14 + $0x3a8] sm:$0xff] }
 0x140   : > { %1361 = vst [vmem:[%s2310_s23 + $0x150] sm:$0xff] %v1297_v21  ;;  %v1231_v53 = vmul.f32 %v2241_v44, %v1093_v0  ;;  %v1232_v18 = vmul.f32 %v2244_v46, %v1094_v51  ;;  %v1089_v39 = vmul.f32 %v1711_v9, %v928_v54  ;;  %v1090_v40 = vmul.f32 %v1712_v6, %v928_v54 }
 0x141   : > { %1362 = vst [vmem:[%s2310_s23 + $0x158] sm:$0xff] %v1298_v58  ;;  %v1233_v10 = vmul.f32 %v2246_v47, %v1095_v45  ;;  %v1234_v60 = vmul.f32 %v2250_v50, %v1096_v36  ;;  %v1091_v55 = vmul.f32 %v1713_v62, %v928_v54  ;;  %v1092_v33 = vmul.f32 %v1714_v35, %v928_v54 }
 0x142   : > { %v1307_v16 = vpack.c.bf16 %v1232_v18, %v1231_v53  ;;  %v1227_v19 = vmul.f32 %v2241_v44, %v1089_v39  ;;  %v1228_v43 = vmul.f32 %v2244_v46, %v1090_v40  ;;  %v918_v20 = vsel %vm917_vm3, %v2864_v13, %v914_v56  ;;  %v1722_v56 = vld [vmem:[%s1993_s14 + $0x3b8] sm:$0xff] }
 0x143   : > { %v1308_v24 = vpack.c.bf16 %v1234_v60, %v1233_v10  ;;  %v1229_v17 = vmul.f32 %v2246_v47, %v1091_v55  ;;  %v1230_v29 = vmul.f32 %v2250_v50, %v1092_v33  ;;  %v1085_v37 = vmul.f32 %v1715_v57, %v918_v20 }
 0x144   : > { %1371 = vst [vmem:[%s2310_s23 + $0x1a0] sm:$0xff] %v1307_v16  ;;  %v1305_v41 = vpack.c.bf16 %v1228_v43, %v1227_v19  ;;  %v1086_v25 = vmul.f32 %v1716_v7, %v918_v20  ;;  %v1087_v61 = vmul.f32 %v1717_v42, %v918_v20  ;;  %v1088_v23 = vmul.f32 %v1718_v4, %v918_v20 }
 0x145   : > { %1372 = vst [vmem:[%s2310_s23 + $0x1a8] sm:$0xff] %v1308_v24  ;;  %v1306_v13 = vpack.c.bf16 %v1230_v29, %v1229_v17  ;;  %v1223_v49 = vmul.f32 %v2241_v44, %v1085_v37  ;;  %v963_v26 = vsub.f32 1.5, %v2902_v12  ;;  %v950_v34 = vmul.f32 %v2898_v5, %v2857_v8  ;;  %v1723_v24 = vld [vmem:[%s1993_s14 + $0x380] sm:$0xff]  ;;  %v1724_v29 = vld [vmem:[%s1993_s14 + $0x388] sm:$0xff]  ;;  %v1725_v37 = vld [vmem:[%s1993_s14 + $0x390] sm:$0xff] }
 0x146   : > { %1369 = vst [vmem:[%s2310_s23 + $0x190] sm:$0xff] %v1305_v41  ;;  %v1224_v22 = vmul.f32 %v2244_v46, %v1086_v25  ;;  %v1225_v38 = vmul.f32 %v2246_v47, %v1087_v61  ;;  %v1226_v27 = vmul.f32 %v2250_v50, %v1088_v23  ;;  %v635_v28 = vmul.f32 %v2219_v63, %v592_v3  ;;  %v1726_v3 = vld [vmem:[%s1993_s14 + $0x398] sm:$0xff]  ;;  %v1727_v23 = vld [vmem:[%s1993_s14 + $0x360] sm:$0xff] }
 0x147   : > { %1370 = vst [vmem:[%s2310_s23 + $0x198] sm:$0xff] %v1306_v13  ;;  %v964_v59 = vmul.f32 %v2869_v52, %v963_v26  ;;  %v951_v12 = vmul.f32 %v2898_v5, %v950_v34  ;;  %v940_v21 = vmul.f32 %v2906_v14, %v2860_v11  ;;  %v980_v63 = vmul.f32 %v2914_v2, %v2862_v15 }
 0x148   : > { %v1303_v58 = vpack.c.bf16 %v1224_v22, %v1223_v49  ;;  %v1304_v30 = vpack.c.bf16 %v1226_v27, %v1225_v38  ;;  %vm946_vm7 = vweird.f32 %v2906_v14  ;;  %vm986_vm10 = vweird.f32 %v2914_v2  ;;  %v1728_v49 = vld [vmem:[%s1993_s14 + $0x368] sm:$0xff]  ;;  %v1730_v22 = vld [vmem:[%s1993_s14 + $0x378] sm:$0xff] }
 0x149   : > { %v968_v0 = vsel %vm967_vm5, %v2869_v52, %v964_v59  ;;  %v952_v1 = vmul.f32 0.5, %v951_v12  ;;  %v941_v51 = vmul.f32 %v2906_v14, %v940_v21  ;;  %v981_v39 = vmul.f32 %v2914_v2, %v980_v63  ;;  %vm947_vm11 = vmor %vm945_vm9, %vm946_vm7  ;;  %v1731_v63 = vld [vmem:[%s1993_s14 + $0x3e0] sm:$0xff] }
 0x14a   : > { %1367 = vst [vmem:[%s2310_s23 + $0x180] sm:$0xff] %v1303_v58  ;;  %v1105_v45 = vmul.f32 %v1719_v32, %v968_v0  ;;  %v1106_v36 = vmul.f32 %v1720_v31, %v968_v0  ;;  %v1107_v54 = vmul.f32 %v1721_v48, %v968_v0  ;;  %v1108_v53 = vmul.f32 %v1722_v56, %v968_v0  ;;  %v1733_v32 = vld [vmem:[%s1993_s14 + $0x3f0] sm:$0xff] }
 0x14b   : > { %1368 = vst [vmem:[%s2310_s23 + $0x188] sm:$0xff] %v1304_v30  ;;  %v953_v18 = vsub.f32 1.5, %v952_v1  ;;  %v942_v9 = vmul.f32 0.5, %v941_v51  ;;  %v2977_v52 = vadd.f32 1e-05, %v635_v28  ;;  %v982_v35 = vmul.f32 0.5, %v981_v39 }
 0x14c   : > { %v1243_v6 = vmul.f32 %v2241_v44, %v1105_v45  ;;  %v1244_v40 = vmul.f32 %v2244_v46, %v1106_v36  ;;  %v1245_v10 = vmul.f32 %v2246_v47, %v1107_v54  ;;  %v1246_v60 = vmul.f32 %v2250_v50, %v1108_v53  ;;  %v1732_v1 = vld [vmem:[%s1993_s14 + $0x3e8] sm:$0xff] }
 0x14d   : > { %v954_v62 = vmul.f32 %v2898_v5, %v953_v18  ;;  %v943_v55 = vsub.f32 1.5, %v942_v9  ;;  %1631 = vrsqrt.f32 %v2977_v52  ;;  %v983_v20 = vsub.f32 1.5, %v982_v35 }
 0x14e   : > { %v1313_v33 = vpack.c.bf16 %v1244_v40, %v1243_v6  ;;  %v1314_v16 = vpack.c.bf16 %v1246_v60, %v1245_v10  ;;  %vm985_vm12 = vweird.f32 %v2862_v15  ;;  %vm975_vm15 = vweird.f32 %v2977_v52 }
 0x14f   : > { %v958_v19 = vsel %vm957_vm8, %v2898_v5, %v954_v62  ;;  %v944_v43 = vmul.f32 %v2906_v14, %v943_v55  ;;  %v984_v5 = vmul.f32 %v2914_v2, %v983_v20  ;;  %vm987_vm13 = vmor %vm985_vm12, %vm986_vm10  ;;  %v1735_v55 = vld [vmem:[%s1993_s14 + $0x3c0] sm:$0xff]  ;;  %v1738_v20 = vld [vmem:[%s1993_s14 + $0x3d8] sm:$0xff] }
 0x150   : > { %1377 = vst [vmem:[%s2310_s23 + $0x1d0] sm:$0xff] %v1313_v33  ;;  %v1101_v17 = vmul.f32 %v1723_v24, %v958_v19  ;;  %v1102_v57 = vmul.f32 %v1724_v29, %v958_v19  ;;  %v1103_v8 = vmul.f32 %v1725_v37, %v958_v19  ;;  %v1104_v41 = vmul.f32 %v1726_v3, %v958_v19  ;;  %v1736_v33 = vld [vmem:[%s1993_s14 + $0x3c8] sm:$0xff]  ;;  %v1737_v19 = vld [vmem:[%s1993_s14 + $0x3d0] sm:$0xff] }
 0x151   : > { %1378 = vst [vmem:[%s2310_s23 + $0x1d8] sm:$0xff] %v1314_v16  ;;  %v948_v11 = vsel %vm947_vm11, %v2906_v14, %v944_v43  ;;  %v1729_v14 = vld [vmem:[%s1993_s14 + $0x370] sm:$0xff]  ;;  %v988_v28 = vsel %vm987_vm13, %v2914_v2, %v984_v5  ;;  %v1734_v2 = vld [vmem:[%s1993_s14 + $0x3f8] sm:$0xff] }
 0x152   : > { %v1239_v7 = vmul.f32 %v2241_v44, %v1101_v17  ;;  %v1240_v25 = vmul.f32 %v2244_v46, %v1102_v57  ;;  %v1241_v42 = vmul.f32 %v2246_v47, %v1103_v8  ;;  %v1242_v61 = vmul.f32 %v2250_v50, %v1104_v41 }
 0x153   : > { %v1632_v4 = vpop.eup %1631  ;;  %v1097_v13 = vmul.f32 %v1727_v23, %v948_v11  ;;  %v1098_v26 = vmul.f32 %v1728_v49, %v948_v11  ;;  %v1099_v34 = vmul.f32 %v1729_v14, %v948_v11  ;;  %v1100_v15 = vmul.f32 %v1730_v22, %v948_v11 }
 0x154   : > { %v1311_v38 = vpack.c.bf16 %v1240_v25, %v1239_v7  ;;  %v1312_v27 = vpack.c.bf16 %v1242_v61, %v1241_v42  ;;  %v970_v59 = vmul.f32 %v1632_v4, %v2977_v52  ;;  %v1113_v0 = vmul.f32 %v1731_v63, %v988_v28 }
 0x155   : > { %v1235_v12 = vmul.f32 %v2241_v44, %v1097_v13  ;;  %v1236_v21 = vmul.f32 %v2244_v46, %v1098_v26  ;;  %v1237_v58 = vmul.f32 %v2246_v47, %v1099_v34  ;;  %v1238_v30 = vmul.f32 %v2250_v50, %v1100_v15 }
 0x156   : > { %1375 = vst [vmem:[%s2310_s23 + $0x1c0] sm:$0xff] %v1311_v38  ;;  %v1114_v51 = vmul.f32 %v1732_v1, %v988_v28  ;;  %v1115_v45 = vmul.f32 %v1733_v32, %v988_v28  ;;  %v1116_v31 = vmul.f32 %v1734_v2, %v988_v28  ;;  %v971_v54 = vmul.f32 %v1632_v4, %v970_v59 }
 0x157   : > { %1376 = vst [vmem:[%s2310_s23 + $0x1c8] sm:$0xff] %v1312_v27  ;;  %v1309_v36 = vpack.c.bf16 %v1236_v21, %v1235_v12  ;;  %v1310_v48 = vpack.c.bf16 %v1238_v30, %v1237_v58  ;;  %v1251_v56 = vmul.f32 %v2241_v44, %v1113_v0  ;;  %vm976_vm14 = vweird.f32 %v1632_v4 }
 0x158   : > { %v1252_v53 = vmul.f32 %v2244_v46, %v1114_v51  ;;  %v1253_v18 = vmul.f32 %v2246_v47, %v1115_v45  ;;  %v1254_v9 = vmul.f32 %v2250_v50, %v1116_v31  ;;  %v972_v39 = vmul.f32 0.5, %v971_v54  ;;  %vm977_vm0 = vmor %vm975_vm15, %vm976_vm14 }
 0x159   : > { %1373 = vst [vmem:[%s2310_s23 + $0x1b0] sm:$0xff] %v1309_v36 }
 0x15a   : > { %1374 = vst [vmem:[%s2310_s23 + $0x1b8] sm:$0xff] %v1310_v48  ;;  %v1317_v6 = vpack.c.bf16 %v1252_v53, %v1251_v56  ;;  %v1318_v40 = vpack.c.bf16 %v1254_v9, %v1253_v18  ;;  %v973_v10 = vsub.f32 1.5, %v972_v39 }
 0x15c   : > { %1381 = vst [vmem:[%s2310_s23 + $0x1f0] sm:$0xff] %v1317_v6  ;;  %v974_v60 = vmul.f32 %v1632_v4, %v973_v10 }
 0x15d   : > { %1382 = vst [vmem:[%s2310_s23 + $0x1f8] sm:$0xff] %v1318_v40 }
 0x15e   : > { %v978_v62 = vsel %vm977_vm0, %v1632_v4, %v974_v60 }
 0x15f   : > { %v1109_v35 = vmul.f32 %v1735_v55, %v978_v62  ;;  %v1110_v16 = vmul.f32 %v1736_v33, %v978_v62  ;;  %v1111_v43 = vmul.f32 %v1737_v19, %v978_v62  ;;  %v1112_v24 = vmul.f32 %v1738_v20, %v978_v62 }
 0x161   : > { %v1247_v52 = vmul.f32 %v2241_v44, %v1109_v35  ;;  %v1248_v17 = vmul.f32 %v2244_v46, %v1110_v16  ;;  %v1249_v29 = vmul.f32 %v2246_v47, %v1111_v43  ;;  %v1250_v57 = vmul.f32 %v2250_v50, %v1112_v24 }
 0x163   : > { %v1315_v37 = vpack.c.bf16 %v1248_v17, %v1247_v52  ;;  %v1316_v8 = vpack.c.bf16 %v1250_v57, %v1249_v29 }
 0x165   : > { %1379 = vst [vmem:[%s2310_s23 + $0x1e0] sm:$0xff] %v1315_v37 }
 0x166   : > { %1380 = vst [vmem:[%s2310_s23 + $0x1e8] sm:$0xff] %v1316_v8 }
 0x167   : > { %1826 = shalt.err (!%p1823_p8)
}
 0x168   : > { %s1875_s5 = smov 256   ;;  %s1876_s6 = smov 16  }
 0x169   : > { %1511 = dma.vmem_to_hbm [thread:$0]  (%p1944_p11), %s1398_s13, 8192, %s1400_s24, %s1384_s19, %s1875_s5, %s1875_s5, %s1876_s6  }
 0x16a PF: > { %s1414_s7 = sand.u32 1, %s1857_s9   ;;  %p3088_p9 = scmp.ge.s32.totalorder %s1869_s12, 2 }
 0x16b   : > { %s1415_s14 = scalar_lea.sflag [#allocation4], %s1414_s7 }
 0x16c   : > { %p1522_p10 = pnand %p3088_p9, %p1948_p12 }
 0x16e   : > { %p1523_p1 = pneg %p1522_p10 }
 0x170   : > { %1852 = dma.done.wait (%p1523_p1), %s1415_s14, 8192  }
 0x171   : > { %1854 = vsyncadd (%p1523_p1), %s1415_s14, 4294959104  ;;  %p16_p2 = scmp.ge.s32.totalorder %s1917_s15, 4   ;;  %s3089_s9 = smov %s1861_s10 }
 0x172   : > { %s3090_s10 = smov %s1865_s11  ;;  %s3091_s11 = smov %s1929_s18 }
 0x173   : > { %s3092_s12 = smov %s1917_s15  ;;  %18 = sbr.rel (!%p16_p2) target bundleno = 6 (0x6), region = 77 }
 0x178   :  { %1421 = vsyncpa [#allocation3], 1 }
 0x179   :  { %1423 = vsyncpa [#allocation3 + $0x1], 1 }
 0x17a   :  { %1424 = vsyncpa [#allocation6], 1 }
 0x17b   :  { %1425 = vsyncpa [#allocation4], 1 }
 0x17c   :  { %1427 = vsyncpa [#allocation4 + $0x1], 1 }

</bundles_post_ra>
